<compile_context>
chip_gen: v5e
topology: v5e:2x2
jax: 0.10.0
libtpu: 0.0.40
codegen_flags: <defaults>
</compile_context>

<pallas_src>
import jax
import jax.numpy as jnp
from jax import lax
from jax.experimental import pallas as pl
from jax.experimental.pallas import tpu as pltpu


def _round_up(x, m):
    return (x + m - 1) // m * m


def _pad_gates_last(w, H, Hp):
    """[..., 3H] -> [..., 3*Hp]: each of the 3 gates zero-padded H -> Hp lanes."""
    lead = w.shape[:-1]
    w3 = w.reshape(lead + (3, H))
    pad = [(0, 0)] * (len(lead) + 1) + [(0, Hp - H)]
    return jnp.pad(w3, pad).reshape(lead + (3 * Hp,))


def _gru_kernel(nchunks_ref,   # SMEM scalar prefetch: [nb] int32, active chunks per batch block
                len_ref,       # [Bblk, 1] int32  per-sequence lengths
                gx_ref,        # [T, Bblk, 3*Hp] f32  precomputed input-gate activations (time-major)
                whh_ref,       # [Hp, 3*Hp] f32  GRU hidden weights (gate-blocked, padded)
                bhh_ref,       # [1, 3*Hp]  f32  GRU hidden bias
                out_ref):      # [Bblk, Hp] f32  hidden-state accumulator / final output
    b = pl.program_id(0)
    c = pl.program_id(1)
    T = gx_ref.shape[0]
    Bblk, Hp = out_ref.shape

    @pl.when(c == 0)
    def _init():
        out_ref[...] = jnp.zeros_like(out_ref)

    # Skip chunks entirely past this batch block's max sequence length.
    @pl.when(c < nchunks_ref[b])
    def _run_chunk():
        lengths = len_ref[...]                                   # [Bblk, 1]
        bhh_b = jnp.broadcast_to(bhh_ref[...], (Bblk, 3 * Hp))   # hoisted broadcast
        t0 = c * T

        def step(t, h):
            gxt = gx_ref[t]                                      # [Bblk, 3Hp]
            gh = jnp.dot(h, whh_ref[...],
                         preferred_element_type=jnp.float32) + bhh_b
            r = jax.nn.sigmoid(gxt[:, 0:Hp] + gh[:, 0:Hp])
            z = jax.nn.sigmoid(gxt[:, Hp:2 * Hp] + gh[:, Hp:2 * Hp])
            n = jnp.tanh(gxt[:, 2 * Hp:3 * Hp] + r * gh[:, 2 * Hp:3 * Hp])
            h_new = (1.0 - z) * n + z * h
            # freeze h past each sequence's length (also masks padded timesteps)
            return jnp.where((t0 + t) < lengths, h_new, h)

        unroll = True if T <= 8 else 4
        out_ref[...] = lax.fori_loop(0, T, step, out_ref[...], unroll=unroll)


def encoder_forward(token_ids, emb_table, wp, bp, wih, whh, bih, bhh,
                    *, time_chunk=32, batch_block=None):
    """Eval-mode Encoder forward. token_ids: [B, S] int32 -> [B, H] f32."""
    B, S = token_ids.shape
    V, E = emb_table.shape
    H = whh.shape[0]

    # ---- layout / tiling parameters ----------------------------------------
    Hp = _round_up(H, 128)                          # lane-dense hidden size
    if batch_block is None:
        # >=8 sublanes per block; >=2 blocks when the batch is big enough (v7x 2 TCs)
        batch_block = 8 if B <= 8 else _round_up(pl.cdiv(B, 2), 8)
    Bp = _round_up(B, batch_block)
    nb = Bp // batch_block
    T = max(1, min(time_chunk, S))                  # time-chunk length
    Sp = _round_up(S, T)
    nc = Sp // T

    # ---- gate-blocked, lane-padded parameters -------------------------------
    wih_p = _pad_gates_last(wih.astype(jnp.float32), H, Hp)            # [E, 3Hp]
    bih_p = _pad_gates_last(bih.astype(jnp.float32), H, Hp)            # [1, 3Hp]
    whh_p = jnp.pad(whh.astype(jnp.float32), ((0, Hp - H), (0, 0)))
    whh_p = _pad_gates_last(whh_p, H, Hp)                              # [Hp, 3Hp]
    bhh_p = _pad_gates_last(bhh.astype(jnp.float32), H, Hp)            # [1, 3Hp]

    # ---- eval-mode algebraic fold: embed -> Linear -> ELU -> W_ih -----------
    # Dropout (p=0.2) is identity in eval mode, which is what makes this fold
    # legal.  TODO(synk): training-mode stochastic dropout (pltpu.prng_*) would
    # have to sit between these stages and is not emitted here.
    proj = jax.nn.elu(emb_table.astype(jnp.float32) @ wp + bp)         # [V, E]
    gate_table = proj @ wih_p + bih_p                                  # [V, 3Hp]

    # ---- per-batch glue: lengths, padding, time-major gather ----------------
    lengths = jnp.sum((token_ids != 0).astype(jnp.int32), axis=1)      # [B]
    lengths_p = jnp.pad(lengths, (0, Bp - B))                          # [Bp]
    ids_p = jnp.pad(token_ids, ((0, Bp - B), (0, Sp - S)))             # [Bp, Sp]
    # Gather straight into time-major [Sp, Bp, 3Hp] (no big activation transpose).
    gx = jnp.take(gate_table, ids_p.T, axis=0)                         # [Sp, Bp, 3Hp]

    max_len_per_block = lengths_p.reshape(nb, batch_block).max(axis=1)
    nchunks = jnp.maximum((max_len_per_block + T - 1) // T, 1).astype(jnp.int32)
    lengths_2d = lengths_p.reshape(Bp, 1)

    # ---- VMEM budget (double-buffered gx is the big consumer) ---------------
    vmem_bytes = 4 * (2 * T * batch_block * 3 * Hp        # gx chunk, 2 buffers
                      + Hp * 3 * Hp + 2 * 3 * Hp          # whh + biases
                      + 2 * batch_block * Hp              # output accumulator
                      + 2 * batch_block)                  # lengths
    vmem_limit = int(min(max(2 * vmem_bytes, 32 << 20), 64 << 20))

    grid_spec = pltpu.PrefetchScalarGridSpec(
        num_scalar_prefetch=1,
        grid=(nb, nc),
        in_specs=[
            pl.BlockSpec((batch_block, 1), lambda b, c, nch: (b, 0)),
            # Clamp the time-chunk index once past this block's max length so
            # skipped chunks issue no new DMA.
            pl.BlockSpec((T, batch_block, 3 * Hp),
                         lambda b, c, nch: (jnp.minimum(c, nch[b] - 1), b, 0)),
            pl.BlockSpec((Hp, 3 * Hp), lambda b, c, nch: (0, 0)),
            pl.BlockSpec((1, 3 * Hp), lambda b, c, nch: (0, 0)),
        ],
        out_specs=pl.BlockSpec((batch_block, Hp), lambda b, c, nch: (b, 0)),
    )

    out_p = pl.pallas_call(
        _gru_kernel,
        out_shape=jax.ShapeDtypeStruct((Bp, Hp), jnp.float32),
        grid_spec=grid_spec,
        compiler_params=pltpu.CompilerParams(
            dimension_semantics=("parallel", "arbitrary"),
            vmem_limit_bytes=vmem_limit),
    )(nchunks, lengths_2d, gx, whh_p, bhh_p)

    return out_p[:B, :H]


def encoder_reference(token_ids, emb_table, wp, bp, wih, whh, bih, bhh):
    """Pure-JAX reference mirroring the PyTorch forward (eval mode)."""
    B, S = token_ids.shape
    H = whh.shape[0]
    lengths = jnp.sum((token_ids != 0).astype(jnp.int32), axis=1)          # [B]
    x = jnp.take(emb_table, token_ids, axis=0).astype(jnp.float32)         # [B,S,E]
    proj = jax.nn.elu(x @ wp + bp)
    h = jnp.zeros((B, H), jnp.float32)
    for t in range(S):
        gx = proj[:, t, :] @ wih + bih
        gh = h @ whh + bhh
        r = jax.nn.sigmoid(gx[:, 0:H] + gh[:, 0:H])
        z = jax.nn.sigmoid(gx[:, H:2 * H] + gh[:, H:2 * H])
        n = jnp.tanh(gx[:, 2 * H:3 * H] + r * gh[:, 2 * H:3 * H])
        h_new = (1.0 - z) * n + z * h
        h = jnp.where((t < lengths)[:, None], h_new, h)
    return h


if __name__ == "__main__":
    B, S, V, E, H = 2, 8, 16, 32, 32

    key = jax.random.PRNGKey(0)
    k_emb, k_ids, k_wp, k_bp, k_wih, k_whh, k_bih, k_bhh = jax.random.split(key, 8)

    # Deterministic synthetic parameters (shapes implied by the module's __init__).
    emb_table = jax.random.normal(k_emb, (V, E), jnp.float32) * 0.1
    wp  = jax.random.normal(k_wp,  (E, E),      jnp.float32) * 0.1   # Linear(E, E)
    bp  = jax.random.normal(k_bp,  (1, E),      jnp.float32) * 0.1
    wih = jax.random.normal(k_wih, (E, 3 * H),  jnp.float32) * 0.1   # GRU W_ih^T
    whh = jax.random.normal(k_whh, (H, 3 * H),  jnp.float32) * 0.1   # GRU W_hh^T
    bih = jax.random.normal(k_bih, (1, 3 * H),  jnp.float32) * 0.1
    bhh = jax.random.normal(k_bhh, (1, 3 * H),  jnp.float32) * 0.1

    # Token ids in [1, V); pad the tail of sequence 1 with zeros so the
    # per-sequence length masking is actually exercised.
    token_ids = jax.random.randint(k_ids, (B, S), 1, V, dtype=jnp.int32)
    token_ids = token_ids.at[1, 5:].set(0)   # sequence 1 has length 5

    out = encoder_forward(token_ids, emb_table, wp, bp, wih, whh, bih, bhh)
    out = jax.block_until_ready(out)

    ref = encoder_reference(token_ids, emb_table, wp, bp, wih, whh, bih, bhh)
    ref = jax.block_until_ready(ref)

    assert out.shape == (B, H)
    assert jnp.allclose(out, ref, atol=1e-3, rtol=1e-3), "mismatch vs reference"
    print("KERNEL_OK")
</pallas_src>

<mosaic_0001>
module attributes {stable_mosaic.version = 11 : i64} {
  func.func @_gru_kernel(%arg0: i32, %arg1: i32, %arg2: memref<1xi32, #tpu.memory_space<smem>>, %arg3: memref<8x1xi32, #tpu.memory_space<vmem>>, %arg4: memref<8x8x384xf32, #tpu.memory_space<vmem>>, %arg5: memref<128x384xf32, #tpu.memory_space<vmem>>, %arg6: memref<1x384xf32, #tpu.memory_space<vmem>>, %arg7: memref<8x128xf32, #tpu.memory_space<vmem>>) attributes {dimension_semantics = [#tpu.dimension_semantics<parallel>, #tpu.dimension_semantics<arbitrary>], iteration_bounds = array<i64: 1, 1>, scalar_prefetch = 1 : i64, scratch_operands = 0 : i64, tpu.core_type = #tpu.core_type<tc>, window_params = [{transform_indices = @transform_0, window_bounds = array<i64: 8, 1>}, {transform_indices = @transform_1, window_bounds = array<i64: 8, 8, 384>}, {pipeline_mode = #tpu.pipeline_mode<synchronous>, transform_indices = @transform_2, window_bounds = array<i64: 128, 384>}, {pipeline_mode = #tpu.pipeline_mode<synchronous>, transform_indices = @transform_3, window_bounds = array<i64: 1, 384>}, {transform_indices = @transform_4, window_bounds = array<i64: 8, 128>}]} {
    %c0_i32 = arith.constant 0 : i32
    %0 = arith.cmpi eq, %arg1, %c0_i32 : i32
    %1 = arith.extui %0 : i1 to i32
    %c0_i32_0 = arith.constant 0 : i32
    %2 = arith.cmpi ne, %1, %c0_i32_0 : i32
    scf.if %2 {
      %cst = arith.constant 0.000000e+00 : f32
      %8 = vector.broadcast %cst : f32 to vector<8x128xf32>
      %c0 = arith.constant 0 : index
      %c0_2 = arith.constant 0 : index
      %9 = vector.load %arg7[%c0, %c0_2] : memref<8x128xf32, #tpu.memory_space<vmem>>, vector<8x128xf32>
      tpu.vector_store %arg7[%c0, %c0_2], %8 {strides = array<i32>} : memref<8x128xf32, #tpu.memory_space<vmem>>, vector<8x128xf32>,
    } else {
    }
    %3 = arith.index_cast %arg0 : i32 to index
    %4 = memref.load %arg2[%3] : memref<1xi32, #tpu.memory_space<smem>>
    %5 = arith.cmpi slt, %arg1, %4 : i32
    %6 = arith.extui %5 : i1 to i32
    %c0_i32_1 = arith.constant 0 : i32
    %7 = arith.cmpi ne, %6, %c0_i32_1 : i32
    scf.if %7 {
      %c0 = arith.constant 0 : index
      %c0_2 = arith.constant 0 : index
      %8 = vector.load %arg3[%c0, %c0_2] : memref<8x1xi32, #tpu.memory_space<vmem>>, vector<8x1xi32>
      %c0_3 = arith.constant 0 : index
      %c0_4 = arith.constant 0 : index
      %9 = vector.load %arg6[%c0_3, %c0_4] : memref<1x384xf32, #tpu.memory_space<vmem>>, vector<1x384xf32>
      %10 = vector.shape_cast %9 : vector<1x384xf32> to vector<1x384xf32>
      %11 = vector.broadcast %10 : vector<1x384xf32> to vector<8x384xf32>
      %c8_i32 = arith.constant 8 : i32
      %12 = arith.muli %arg1, %c8_i32 : i32
      %c0_5 = arith.constant 0 : index
      %c0_6 = arith.constant 0 : index
      %13 = vector.load %arg7[%c0_5, %c0_6] : memref<8x128xf32, #tpu.memory_space<vmem>>, vector<8x128xf32>
      %c0_i32_7 = arith.constant 0 : i32
      %14 = arith.index_cast %c0_i32_7 : i32 to index
      %c0_8 = arith.constant 0 : index
      %c0_9 = arith.constant 0 : index
      %15 = vector.load %arg4[%14, %c0_8, %c0_9] : memref<8x8x384xf32, #tpu.memory_space<vmem>>, vector<1x8x384xf32>
      %16 = vector.shape_cast %15 : vector<1x8x384xf32> to vector<8x384xf32>
      %c0_10 = arith.constant 0 : index
      %c0_11 = arith.constant 0 : index
      %17 = vector.load %arg5[%c0_10, %c0_11] : memref<128x384xf32, #tpu.memory_space<vmem>>, vector<128x384xf32>
      %cst = arith.constant dense<0.000000e+00> : vector<8x384xf32>
      %18 = tpu.matmul %13, %17, %cst {dimension_numbers = #tpu.dot_dimension_numbers<[1], [0], [0], [1], [0, 0, 1, 1], [], []>} : vector<8x128xf32>, vector<128x384xf32>, vector<8x384xf32> -> vector<8x384xf32>
      %19 = arith.addf %18, %11 : vector<8x384xf32>
      %20 = vector.extract_strided_slice %16 {offsets = [0, 0], sizes = [8, 128], strides = [1, 1]} : vector<8x384xf32> to vector<8x128xf32>
      %21 = vector.extract_strided_slice %19 {offsets = [0, 0], sizes = [8, 128], strides = [1, 1]} : vector<8x384xf32> to vector<8x128xf32>
      %22 = arith.addf %20, %21 : vector<8x128xf32>
      %23 = arith.negf %22 : vector<8x128xf32>
      %24 = math.exp %23 : vector<8x128xf32>
      %cst_12 = arith.constant 1.000000e+00 : f32
      %25 = vector.broadcast %cst_12 : f32 to vector<8x128xf32>
      %26 = arith.addf %25, %24 : vector<8x128xf32>
      %27 = arith.divf %25, %26 : vector<8x128xf32>
      %28 = vector.extract_strided_slice %16 {offsets = [0, 128], sizes = [8, 128], strides = [1, 1]} : vector<8x384xf32> to vector<8x128xf32>
      %29 = vector.extract_strided_slice %19 {offsets = [0, 128], sizes = [8, 128], strides = [1, 1]} : vector<8x384xf32> to vector<8x128xf32>
      %30 = arith.addf %28, %29 : vector<8x128xf32>
      %31 = arith.negf %30 : vector<8x128xf32>
      %32 = math.exp %31 : vector<8x128xf32>
      %cst_13 = arith.constant 1.000000e+00 : f32
      %33 = vector.broadcast %cst_13 : f32 to vector<8x128xf32>
      %34 = arith.addf %33, %32 : vector<8x128xf32>
      %35 = arith.divf %33, %34 : vector<8x128xf32>
      %36 = vector.extract_strided_slice %16 {offsets = [0, 256], sizes = [8, 128], strides = [1, 1]} : vector<8x384xf32> to vector<8x128xf32>
      %37 = vector.extract_strided_slice %19 {offsets = [0, 256], sizes = [8, 128], strides = [1, 1]} : vector<8x384xf32> to vector<8x128xf32>
      %38 = arith.mulf %27, %37 : vector<8x128xf32>
      %39 = arith.addf %36, %38 : vector<8x128xf32>
      %40 = math.tanh %39 : vector<8x128xf32>
      %cst_14 = arith.constant 1.000000e+00 : f32
      %41 = vector.broadcast %cst_14 : f32 to vector<8x128xf32>
      %42 = arith.subf %41, %35 : vector<8x128xf32>
      %43 = arith.mulf %42, %40 : vector<8x128xf32>
      %44 = arith.mulf %35, %13 : vector<8x128xf32>
      %45 = arith.addf %43, %44 : vector<8x128xf32>
      %46 = arith.addi %12, %c0_i32_7 : i32
      %47 = vector.broadcast %46 : i32 to vector<8x1xi32>
      %48 = arith.cmpi slt, %47, %8 : vector<8x1xi32>
      %49 = vector.shape_cast %48 : vector<8x1xi1> to vector<8x1xi1>
      %50 = vector.broadcast %49 : vector<8x1xi1> to vector<8x128xi1>
      %51 = arith.select %50, %45, %13 : vector<8x128xi1>, vector<8x128xf32>
      %c1_i32 = arith.constant 1 : i32
      %52 = arith.index_cast %c1_i32 : i32 to index
      %c0_15 = arith.constant 0 : index
      %c0_16 = arith.constant 0 : index
      %53 = vector.load %arg4[%52, %c0_15, %c0_16] : memref<8x8x384xf32, #tpu.memory_space<vmem>>, vector<1x8x384xf32>
      %54 = vector.shape_cast %53 : vector<1x8x384xf32> to vector<8x384xf32>
      %c0_17 = arith.constant 0 : index
      %c0_18 = arith.constant 0 : index
      %55 = vector.load %arg5[%c0_17, %c0_18] : memref<128x384xf32, #tpu.memory_space<vmem>>, vector<128x384xf32>
      %cst_19 = arith.constant dense<0.000000e+00> : vector<8x384xf32>
      %56 = tpu.matmul %51, %55, %cst_19 {dimension_numbers = #tpu.dot_dimension_numbers<[1], [0], [0], [1], [0, 0, 1, 1], [], []>} : vector<8x128xf32>, vector<128x384xf32>, vector<8x384xf32> -> vector<8x384xf32>
      %57 = arith.addf %56, %11 : vector<8x384xf32>
      %58 = vector.extract_strided_slice %54 {offsets = [0, 0], sizes = [8, 128], strides = [1, 1]} : vector<8x384xf32> to vector<8x128xf32>
      %59 = vector.extract_strided_slice %57 {offsets = [0, 0], sizes = [8, 128], strides = [1, 1]} : vector<8x384xf32> to vector<8x128xf32>
      %60 = arith.addf %58, %59 : vector<8x128xf32>
      %61 = arith.negf %60 : vector<8x128xf32>
      %62 = math.exp %61 : vector<8x128xf32>
      %cst_20 = arith.constant 1.000000e+00 : f32
      %63 = vector.broadcast %cst_20 : f32 to vector<8x128xf32>
      %64 = arith.addf %63, %62 : vector<8x128xf32>
      %65 = arith.divf %63, %64 : vector<8x128xf32>
      %66 = vector.extract_strided_slice %54 {offsets = [0, 128], sizes = [8, 128], strides = [1, 1]} : vector<8x384xf32> to vector<8x128xf32>
      %67 = vector.extract_strided_slice %57 {offsets = [0, 128], sizes = [8, 128], strides = [1, 1]} : vector<8x384xf32> to vector<8x128xf32>
      %68 = arith.addf %66, %67 : vector<8x128xf32>
      %69 = arith.negf %68 : vector<8x128xf32>
      %70 = math.exp %69 : vector<8x128xf32>
      %cst_21 = arith.constant 1.000000e+00 : f32
      %71 = vector.broadcast %cst_21 : f32 to vector<8x128xf32>
      %72 = arith.addf %71, %70 : vector<8x128xf32>
      %73 = arith.divf %71, %72 : vector<8x128xf32>
      %74 = vector.extract_strided_slice %54 {offsets = [0, 256], sizes = [8, 128], strides = [1, 1]} : vector<8x384xf32> to vector<8x128xf32>
      %75 = vector.extract_strided_slice %57 {offsets = [0, 256], sizes = [8, 128], strides = [1, 1]} : vector<8x384xf32> to vector<8x128xf32>
      %76 = arith.mulf %65, %75 : vector<8x128xf32>
      %77 = arith.addf %74, %76 : vector<8x128xf32>
      %78 = math.tanh %77 : vector<8x128xf32>
      %cst_22 = arith.constant 1.000000e+00 : f32
      %79 = vector.broadcast %cst_22 : f32 to vector<8x128xf32>
      %80 = arith.subf %79, %73 : vector<8x128xf32>
      %81 = arith.mulf %80, %78 : vector<8x128xf32>
      %82 = arith.mulf %73, %51 : vector<8x128xf32>
      %83 = arith.addf %81, %82 : vector<8x128xf32>
      %84 = arith.addi %12, %c1_i32 : i32
      %85 = vector.broadcast %84 : i32 to vector<8x1xi32>
      %86 = arith.cmpi slt, %85, %8 : vector<8x1xi32>
      %87 = vector.shape_cast %86 : vector<8x1xi1> to vector<8x1xi1>
      %88 = vector.broadcast %87 : vector<8x1xi1> to vector<8x128xi1>
      %89 = arith.select %88, %83, %51 : vector<8x128xi1>, vector<8x128xf32>
      %c2_i32 = arith.constant 2 : i32
      %90 = arith.index_cast %c2_i32 : i32 to index
      %c0_23 = arith.constant 0 : index
      %c0_24 = arith.constant 0 : index
      %91 = vector.load %arg4[%90, %c0_23, %c0_24] : memref<8x8x384xf32, #tpu.memory_space<vmem>>, vector<1x8x384xf32>
      %92 = vector.shape_cast %91 : vector<1x8x384xf32> to vector<8x384xf32>
      %c0_25 = arith.constant 0 : index
      %c0_26 = arith.constant 0 : index
      %93 = vector.load %arg5[%c0_25, %c0_26] : memref<128x384xf32, #tpu.memory_space<vmem>>, vector<128x384xf32>
      %cst_27 = arith.constant dense<0.000000e+00> : vector<8x384xf32>
      %94 = tpu.matmul %89, %93, %cst_27 {dimension_numbers = #tpu.dot_dimension_numbers<[1], [0], [0], [1], [0, 0, 1, 1], [], []>} : vector<8x128xf32>, vector<128x384xf32>, vector<8x384xf32> -> vector<8x384xf32>
      %95 = arith.addf %94, %11 : vector<8x384xf32>
      %96 = vector.extract_strided_slice %92 {offsets = [0, 0], sizes = [8, 128], strides = [1, 1]} : vector<8x384xf32> to vector<8x128xf32>
      %97 = vector.extract_strided_slice %95 {offsets = [0, 0], sizes = [8, 128], strides = [1, 1]} : vector<8x384xf32> to vector<8x128xf32>
      %98 = arith.addf %96, %97 : vector<8x128xf32>
      %99 = arith.negf %98 : vector<8x128xf32>
      %100 = math.exp %99 : vector<8x128xf32>
      %cst_28 = arith.constant 1.000000e+00 : f32
      %101 = vector.broadcast %cst_28 : f32 to vector<8x128xf32>
      %102 = arith.addf %101, %100 : vector<8x128xf32>
      %103 = arith.divf %101, %102 : vector<8x128xf32>
      %104 = vector.extract_strided_slice %92 {offsets = [0, 128], sizes = [8, 128], strides = [1, 1]} : vector<8x384xf32> to vector<8x128xf32>
      %105 = vector.extract_strided_slice %95 {offsets = [0, 128], sizes = [8, 128], strides = [1, 1]} : vector<8x384xf32> to vector<8x128xf32>
      %106 = arith.addf %104, %105 : vector<8x128xf32>
      %107 = arith.negf %106 : vector<8x128xf32>
      %108 = math.exp %107 : vector<8x128xf32>
      %cst_29 = arith.constant 1.000000e+00 : f32
      %109 = vector.broadcast %cst_29 : f32 to vector<8x128xf32>
      %110 = arith.addf %109, %108 : vector<8x128xf32>
      %111 = arith.divf %109, %110 : vector<8x128xf32>
      %112 = vector.extract_strided_slice %92 {offsets = [0, 256], sizes = [8, 128], strides = [1, 1]} : vector<8x384xf32> to vector<8x128xf32>
      %113 = vector.extract_strided_slice %95 {offsets = [0, 256], sizes = [8, 128], strides = [1, 1]} : vector<8x384xf32> to vector<8x128xf32>
      %114 = arith.mulf %103, %113 : vector<8x128xf32>
      %115 = arith.addf %112, %114 : vector<8x128xf32>
      %116 = math.tanh %115 : vector<8x128xf32>
      %cst_30 = arith.constant 1.000000e+00 : f32
      %117 = vector.broadcast %cst_30 : f32 to vector<8x128xf32>
      %118 = arith.subf %117, %111 : vector<8x128xf32>
      %119 = arith.mulf %118, %116 : vector<8x128xf32>
      %120 = arith.mulf %111, %89 : vector<8x128xf32>
      %121 = arith.addf %119, %120 : vector<8x128xf32>
      %122 = arith.addi %12, %c2_i32 : i32
      %123 = vector.broadcast %122 : i32 to vector<8x1xi32>
      %124 = arith.cmpi slt, %123, %8 : vector<8x1xi32>
      %125 = vector.shape_cast %124 : vector<8x1xi1> to vector<8x1xi1>
      %126 = vector.broadcast %125 : vector<8x1xi1> to vector<8x128xi1>
      %127 = arith.select %126, %121, %89 : vector<8x128xi1>, vector<8x128xf32>
      %c3_i32 = arith.constant 3 : i32
      %128 = arith.index_cast %c3_i32 : i32 to index
      %c0_31 = arith.constant 0 : index
      %c0_32 = arith.constant 0 : index
      %129 = vector.load %arg4[%128, %c0_31, %c0_32] : memref<8x8x384xf32, #tpu.memory_space<vmem>>, vector<1x8x384xf32>
      %130 = vector.shape_cast %129 : vector<1x8x384xf32> to vector<8x384xf32>
      %c0_33 = arith.constant 0 : index
      %c0_34 = arith.constant 0 : index
      %131 = vector.load %arg5[%c0_33, %c0_34] : memref<128x384xf32, #tpu.memory_space<vmem>>, vector<128x384xf32>
      %cst_35 = arith.constant dense<0.000000e+00> : vector<8x384xf32>
      %132 = tpu.matmul %127, %131, %cst_35 {dimension_numbers = #tpu.dot_dimension_numbers<[1], [0], [0], [1], [0, 0, 1, 1], [], []>} : vector<8x128xf32>, vector<128x384xf32>, vector<8x384xf32> -> vector<8x384xf32>
      %133 = arith.addf %132, %11 : vector<8x384xf32>
      %134 = vector.extract_strided_slice %130 {offsets = [0, 0], sizes = [8, 128], strides = [1, 1]} : vector<8x384xf32> to vector<8x128xf32>
      %135 = vector.extract_strided_slice %133 {offsets = [0, 0], sizes = [8, 128], strides = [1, 1]} : vector<8x384xf32> to vector<8x128xf32>
      %136 = arith.addf %134, %135 : vector<8x128xf32>
      %137 = arith.negf %136 : vector<8x128xf32>
      %138 = math.exp %137 : vector<8x128xf32>
      %cst_36 = arith.constant 1.000000e+00 : f32
      %139 = vector.broadcast %cst_36 : f32 to vector<8x128xf32>
      %140 = arith.addf %139, %138 : vector<8x128xf32>
      %141 = arith.divf %139, %140 : vector<8x128xf32>
      %142 = vector.extract_strided_slice %130 {offsets = [0, 128], sizes = [8, 128], strides = [1, 1]} : vector<8x384xf32> to vector<8x128xf32>
      %143 = vector.extract_strided_slice %133 {offsets = [0, 128], sizes = [8, 128], strides = [1, 1]} : vector<8x384xf32> to vector<8x128xf32>
      %144 = arith.addf %142, %143 : vector<8x128xf32>
      %145 = arith.negf %144 : vector<8x128xf32>
      %146 = math.exp %145 : vector<8x128xf32>
      %cst_37 = arith.constant 1.000000e+00 : f32
      %147 = vector.broadcast %cst_37 : f32 to vector<8x128xf32>
      %148 = arith.addf %147, %146 : vector<8x128xf32>
      %149 = arith.divf %147, %148 : vector<8x128xf32>
      %150 = vector.extract_strided_slice %130 {offsets = [0, 256], sizes = [8, 128], strides = [1, 1]} : vector<8x384xf32> to vector<8x128xf32>
      %151 = vector.extract_strided_slice %133 {offsets = [0, 256], sizes = [8, 128], strides = [1, 1]} : vector<8x384xf32> to vector<8x128xf32>
      %152 = arith.mulf %141, %151 : vector<8x128xf32>
      %153 = arith.addf %150, %152 : vector<8x128xf32>
      %154 = math.tanh %153 : vector<8x128xf32>
      %cst_38 = arith.constant 1.000000e+00 : f32
      %155 = vector.broadcast %cst_38 : f32 to vector<8x128xf32>
      %156 = arith.subf %155, %149 : vector<8x128xf32>
      %157 = arith.mulf %156, %154 : vector<8x128xf32>
      %158 = arith.mulf %149, %127 : vector<8x128xf32>
      %159 = arith.addf %157, %158 : vector<8x128xf32>
      %160 = arith.addi %12, %c3_i32 : i32
      %161 = vector.broadcast %160 : i32 to vector<8x1xi32>
      %162 = arith.cmpi slt, %161, %8 : vector<8x1xi32>
      %163 = vector.shape_cast %162 : vector<8x1xi1> to vector<8x1xi1>
      %164 = vector.broadcast %163 : vector<8x1xi1> to vector<8x128xi1>
      %165 = arith.select %164, %159, %127 : vector<8x128xi1>, vector<8x128xf32>
      %c4_i32 = arith.constant 4 : i32
      %166 = arith.index_cast %c4_i32 : i32 to index
      %c0_39 = arith.constant 0 : index
      %c0_40 = arith.constant 0 : index
      %167 = vector.load %arg4[%166, %c0_39, %c0_40] : memref<8x8x384xf32, #tpu.memory_space<vmem>>, vector<1x8x384xf32>
      %168 = vector.shape_cast %167 : vector<1x8x384xf32> to vector<8x384xf32>
      %c0_41 = arith.constant 0 : index
      %c0_42 = arith.constant 0 : index
      %169 = vector.load %arg5[%c0_41, %c0_42] : memref<128x384xf32, #tpu.memory_space<vmem>>, vector<128x384xf32>
      %cst_43 = arith.constant dense<0.000000e+00> : vector<8x384xf32>
      %170 = tpu.matmul %165, %169, %cst_43 {dimension_numbers = #tpu.dot_dimension_numbers<[1], [0], [0], [1], [0, 0, 1, 1], [], []>} : vector<8x128xf32>, vector<128x384xf32>, vector<8x384xf32> -> vector<8x384xf32>
      %171 = arith.addf %170, %11 : vector<8x384xf32>
      %172 = vector.extract_strided_slice %168 {offsets = [0, 0], sizes = [8, 128], strides = [1, 1]} : vector<8x384xf32> to vector<8x128xf32>
      %173 = vector.extract_strided_slice %171 {offsets = [0, 0], sizes = [8, 128], strides = [1, 1]} : vector<8x384xf32> to vector<8x128xf32>
      %174 = arith.addf %172, %173 : vector<8x128xf32>
      %175 = arith.negf %174 : vector<8x128xf32>
      %176 = math.exp %175 : vector<8x128xf32>
      %cst_44 = arith.constant 1.000000e+00 : f32
      %177 = vector.broadcast %cst_44 : f32 to vector<8x128xf32>
      %178 = arith.addf %177, %176 : vector<8x128xf32>
      %179 = arith.divf %177, %178 : vector<8x128xf32>
      %180 = vector.extract_strided_slice %168 {offsets = [0, 128], sizes = [8, 128], strides = [1, 1]} : vector<8x384xf32> to vector<8x128xf32>
      %181 = vector.extract_strided_slice %171 {offsets = [0, 128], sizes = [8, 128], strides = [1, 1]} : vector<8x384xf32> to vector<8x128xf32>
      %182 = arith.addf %180, %181 : vector<8x128xf32>
      %183 = arith.negf %182 : vector<8x128xf32>
      %184 = math.exp %183 : vector<8x128xf32>
      %cst_45 = arith.constant 1.000000e+00 : f32
      %185 = vector.broadcast %cst_45 : f32 to vector<8x128xf32>
      %186 = arith.addf %185, %184 : vector<8x128xf32>
      %187 = arith.divf %185, %186 : vector<8x128xf32>
      %188 = vector.extract_strided_slice %168 {offsets = [0, 256], sizes = [8, 128], strides = [1, 1]} : vector<8x384xf32> to vector<8x128xf32>
      %189 = vector.extract_strided_slice %171 {offsets = [0, 256], sizes = [8, 128], strides = [1, 1]} : vector<8x384xf32> to vector<8x128xf32>
      %190 = arith.mulf %179, %189 : vector<8x128xf32>
      %191 = arith.addf %188, %190 : vector<8x128xf32>
      %192 = math.tanh %191 : vector<8x128xf32>
      %cst_46 = arith.constant 1.000000e+00 : f32
      %193 = vector.broadcast %cst_46 : f32 to vector<8x128xf32>
      %194 = arith.subf %193, %187 : vector<8x128xf32>
      %195 = arith.mulf %194, %192 : vector<8x128xf32>
      %196 = arith.mulf %187, %165 : vector<8x128xf32>
      %197 = arith.addf %195, %196 : vector<8x128xf32>
      %198 = arith.addi %12, %c4_i32 : i32
      %199 = vector.broadcast %198 : i32 to vector<8x1xi32>
      %200 = arith.cmpi slt, %199, %8 : vector<8x1xi32>
      %201 = vector.shape_cast %200 : vector<8x1xi1> to vector<8x1xi1>
      %202 = vector.broadcast %201 : vector<8x1xi1> to vector<8x128xi1>
      %203 = arith.select %202, %197, %165 : vector<8x128xi1>, vector<8x128xf32>
      %c5_i32 = arith.constant 5 : i32
      %204 = arith.index_cast %c5_i32 : i32 to index
      %c0_47 = arith.constant 0 : index
      %c0_48 = arith.constant 0 : index
      %205 = vector.load %arg4[%204, %c0_47, %c0_48] : memref<8x8x384xf32, #tpu.memory_space<vmem>>, vector<1x8x384xf32>
      %206 = vector.shape_cast %205 : vector<1x8x384xf32> to vector<8x384xf32>
      %c0_49 = arith.constant 0 : index
      %c0_50 = arith.constant 0 : index
      %207 = vector.load %arg5[%c0_49, %c0_50] : memref<128x384xf32, #tpu.memory_space<vmem>>, vector<128x384xf32>
      %cst_51 = arith.constant dense<0.000000e+00> : vector<8x384xf32>
      %208 = tpu.matmul %203, %207, %cst_51 {dimension_numbers = #tpu.dot_dimension_numbers<[1], [0], [0], [1], [0, 0, 1, 1], [], []>} : vector<8x128xf32>, vector<128x384xf32>, vector<8x384xf32> -> vector<8x384xf32>
      %209 = arith.addf %208, %11 : vector<8x384xf32>
      %210 = vector.extract_strided_slice %206 {offsets = [0, 0], sizes = [8, 128], strides = [1, 1]} : vector<8x384xf32> to vector<8x128xf32>
      %211 = vector.extract_strided_slice %209 {offsets = [0, 0], sizes = [8, 128], strides = [1, 1]} : vector<8x384xf32> to vector<8x128xf32>
      %212 = arith.addf %210, %211 : vector<8x128xf32>
      %213 = arith.negf %212 : vector<8x128xf32>
      %214 = math.exp %213 : vector<8x128xf32>
      %cst_52 = arith.constant 1.000000e+00 : f32
      %215 = vector.broadcast %cst_52 : f32 to vector<8x128xf32>
      %216 = arith.addf %215, %214 : vector<8x128xf32>
      %217 = arith.divf %215, %216 : vector<8x128xf32>
      %218 = vector.extract_strided_slice %206 {offsets = [0, 128], sizes = [8, 128], strides = [1, 1]} : vector<8x384xf32> to vector<8x128xf32>
      %219 = vector.extract_strided_slice %209 {offsets = [0, 128], sizes = [8, 128], strides = [1, 1]} : vector<8x384xf32> to vector<8x128xf32>
      %220 = arith.addf %218, %219 : vector<8x128xf32>
      %221 = arith.negf %220 : vector<8x128xf32>
      %222 = math.exp %221 : vector<8x128xf32>
      %cst_53 = arith.constant 1.000000e+00 : f32
      %223 = vector.broadcast %cst_53 : f32 to vector<8x128xf32>
      %224 = arith.addf %223, %222 : vector<8x128xf32>
      %225 = arith.divf %223, %224 : vector<8x128xf32>
      %226 = vector.extract_strided_slice %206 {offsets = [0, 256], sizes = [8, 128], strides = [1, 1]} : vector<8x384xf32> to vector<8x128xf32>
      %227 = vector.extract_strided_slice %209 {offsets = [0, 256], sizes = [8, 128], strides = [1, 1]} : vector<8x384xf32> to vector<8x128xf32>
      %228 = arith.mulf %217, %227 : vector<8x128xf32>
      %229 = arith.addf %226, %228 : vector<8x128xf32>
      %230 = math.tanh %229 : vector<8x128xf32>
      %cst_54 = arith.constant 1.000000e+00 : f32
      %231 = vector.broadcast %cst_54 : f32 to vector<8x128xf32>
      %232 = arith.subf %231, %225 : vector<8x128xf32>
      %233 = arith.mulf %232, %230 : vector<8x128xf32>
      %234 = arith.mulf %225, %203 : vector<8x128xf32>
      %235 = arith.addf %233, %234 : vector<8x128xf32>
      %236 = arith.addi %12, %c5_i32 : i32
      %237 = vector.broadcast %236 : i32 to vector<8x1xi32>
      %238 = arith.cmpi slt, %237, %8 : vector<8x1xi32>
      %239 = vector.shape_cast %238 : vector<8x1xi1> to vector<8x1xi1>
      %240 = vector.broadcast %239 : vector<8x1xi1> to vector<8x128xi1>
      %241 = arith.select %240, %235, %203 : vector<8x128xi1>, vector<8x128xf32>
      %c6_i32 = arith.constant 6 : i32
      %242 = arith.index_cast %c6_i32 : i32 to index
      %c0_55 = arith.constant 0 : index
      %c0_56 = arith.constant 0 : index
      %243 = vector.load %arg4[%242, %c0_55, %c0_56] : memref<8x8x384xf32, #tpu.memory_space<vmem>>, vector<1x8x384xf32>
      %244 = vector.shape_cast %243 : vector<1x8x384xf32> to vector<8x384xf32>
      %c0_57 = arith.constant 0 : index
      %c0_58 = arith.constant 0 : index
      %245 = vector.load %arg5[%c0_57, %c0_58] : memref<128x384xf32, #tpu.memory_space<vmem>>, vector<128x384xf32>
      %cst_59 = arith.constant dense<0.000000e+00> : vector<8x384xf32>
      %246 = tpu.matmul %241, %245, %cst_59 {dimension_numbers = #tpu.dot_dimension_numbers<[1], [0], [0], [1], [0, 0, 1, 1], [], []>} : vector<8x128xf32>, vector<128x384xf32>, vector<8x384xf32> -> vector<8x384xf32>
      %247 = arith.addf %246, %11 : vector<8x384xf32>
      %248 = vector.extract_strided_slice %244 {offsets = [0, 0], sizes = [8, 128], strides = [1, 1]} : vector<8x384xf32> to vector<8x128xf32>
      %249 = vector.extract_strided_slice %247 {offsets = [0, 0], sizes = [8, 128], strides = [1, 1]} : vector<8x384xf32> to vector<8x128xf32>
      %250 = arith.addf %248, %249 : vector<8x128xf32>
      %251 = arith.negf %250 : vector<8x128xf32>
      %252 = math.exp %251 : vector<8x128xf32>
      %cst_60 = arith.constant 1.000000e+00 : f32
      %253 = vector.broadcast %cst_60 : f32 to vector<8x128xf32>
      %254 = arith.addf %253, %252 : vector<8x128xf32>
      %255 = arith.divf %253, %254 : vector<8x128xf32>
      %256 = vector.extract_strided_slice %244 {offsets = [0, 128], sizes = [8, 128], strides = [1, 1]} : vector<8x384xf32> to vector<8x128xf32>
      %257 = vector.extract_strided_slice %247 {offsets = [0, 128], sizes = [8, 128], strides = [1, 1]} : vector<8x384xf32> to vector<8x128xf32>
      %258 = arith.addf %256, %257 : vector<8x128xf32>
      %259 = arith.negf %258 : vector<8x128xf32>
      %260 = math.exp %259 : vector<8x128xf32>
      %cst_61 = arith.constant 1.000000e+00 : f32
      %261 = vector.broadcast %cst_61 : f32 to vector<8x128xf32>
      %262 = arith.addf %261, %260 : vector<8x128xf32>
      %263 = arith.divf %261, %262 : vector<8x128xf32>
      %264 = vector.extract_strided_slice %244 {offsets = [0, 256], sizes = [8, 128], strides = [1, 1]} : vector<8x384xf32> to vector<8x128xf32>
      %265 = vector.extract_strided_slice %247 {offsets = [0, 256], sizes = [8, 128], strides = [1, 1]} : vector<8x384xf32> to vector<8x128xf32>
      %266 = arith.mulf %255, %265 : vector<8x128xf32>
      %267 = arith.addf %264, %266 : vector<8x128xf32>
      %268 = math.tanh %267 : vector<8x128xf32>
      %cst_62 = arith.constant 1.000000e+00 : f32
      %269 = vector.broadcast %cst_62 : f32 to vector<8x128xf32>
      %270 = arith.subf %269, %263 : vector<8x128xf32>
      %271 = arith.mulf %270, %268 : vector<8x128xf32>
      %272 = arith.mulf %263, %241 : vector<8x128xf32>
      %273 = arith.addf %271, %272 : vector<8x128xf32>
      %274 = arith.addi %12, %c6_i32 : i32
      %275 = vector.broadcast %274 : i32 to vector<8x1xi32>
      %276 = arith.cmpi slt, %275, %8 : vector<8x1xi32>
      %277 = vector.shape_cast %276 : vector<8x1xi1> to vector<8x1xi1>
      %278 = vector.broadcast %277 : vector<8x1xi1> to vector<8x128xi1>
      %279 = arith.select %278, %273, %241 : vector<8x128xi1>, vector<8x128xf32>
      %c7_i32 = arith.constant 7 : i32
      %280 = arith.index_cast %c7_i32 : i32 to index
      %c0_63 = arith.constant 0 : index
      %c0_64 = arith.constant 0 : index
      %281 = vector.load %arg4[%280, %c0_63, %c0_64] : memref<8x8x384xf32, #tpu.memory_space<vmem>>, vector<1x8x384xf32>
      %282 = vector.shape_cast %281 : vector<1x8x384xf32> to vector<8x384xf32>
      %c0_65 = arith.constant 0 : index
      %c0_66 = arith.constant 0 : index
      %283 = vector.load %arg5[%c0_65, %c0_66] : memref<128x384xf32, #tpu.memory_space<vmem>>, vector<128x384xf32>
      %cst_67 = arith.constant dense<0.000000e+00> : vector<8x384xf32>
      %284 = tpu.matmul %279, %283, %cst_67 {dimension_numbers = #tpu.dot_dimension_numbers<[1], [0], [0], [1], [0, 0, 1, 1], [], []>} : vector<8x128xf32>, vector<128x384xf32>, vector<8x384xf32> -> vector<8x384xf32>
      %285 = arith.addf %284, %11 : vector<8x384xf32>
      %286 = vector.extract_strided_slice %282 {offsets = [0, 0], sizes = [8, 128], strides = [1, 1]} : vector<8x384xf32> to vector<8x128xf32>
      %287 = vector.extract_strided_slice %285 {offsets = [0, 0], sizes = [8, 128], strides = [1, 1]} : vector<8x384xf32> to vector<8x128xf32>
      %288 = arith.addf %286, %287 : vector<8x128xf32>
      %289 = arith.negf %288 : vector<8x128xf32>
      %290 = math.exp %289 : vector<8x128xf32>
      %cst_68 = arith.constant 1.000000e+00 : f32
      %291 = vector.broadcast %cst_68 : f32 to vector<8x128xf32>
      %292 = arith.addf %291, %290 : vector<8x128xf32>
      %293 = arith.divf %291, %292 : vector<8x128xf32>
      %294 = vector.extract_strided_slice %282 {offsets = [0, 128], sizes = [8, 128], strides = [1, 1]} : vector<8x384xf32> to vector<8x128xf32>
      %295 = vector.extract_strided_slice %285 {offsets = [0, 128], sizes = [8, 128], strides = [1, 1]} : vector<8x384xf32> to vector<8x128xf32>
      %296 = arith.addf %294, %295 : vector<8x128xf32>
      %297 = arith.negf %296 : vector<8x128xf32>
      %298 = math.exp %297 : vector<8x128xf32>
      %cst_69 = arith.constant 1.000000e+00 : f32
      %299 = vector.broadcast %cst_69 : f32 to vector<8x128xf32>
      %300 = arith.addf %299, %298 : vector<8x128xf32>
      %301 = arith.divf %299, %300 : vector<8x128xf32>
      %302 = vector.extract_strided_slice %282 {offsets = [0, 256], sizes = [8, 128], strides = [1, 1]} : vector<8x384xf32> to vector<8x128xf32>
      %303 = vector.extract_strided_slice %285 {offsets = [0, 256], sizes = [8, 128], strides = [1, 1]} : vector<8x384xf32> to vector<8x128xf32>
      %304 = arith.mulf %293, %303 : vector<8x128xf32>
      %305 = arith.addf %302, %304 : vector<8x128xf32>
      %306 = math.tanh %305 : vector<8x128xf32>
      %cst_70 = arith.constant 1.000000e+00 : f32
      %307 = vector.broadcast %cst_70 : f32 to vector<8x128xf32>
      %308 = arith.subf %307, %301 : vector<8x128xf32>
      %309 = arith.mulf %308, %306 : vector<8x128xf32>
      %310 = arith.mulf %301, %279 : vector<8x128xf32>
      %311 = arith.addf %309, %310 : vector<8x128xf32>
      %312 = arith.addi %12, %c7_i32 : i32
      %313 = vector.broadcast %312 : i32 to vector<8x1xi32>
      %314 = arith.cmpi slt, %313, %8 : vector<8x1xi32>
      %315 = vector.shape_cast %314 : vector<8x1xi1> to vector<8x1xi1>
      %316 = vector.broadcast %315 : vector<8x1xi1> to vector<8x128xi1>
      %317 = arith.select %316, %311, %279 : vector<8x128xi1>, vector<8x128xf32>
      %c8_i32_71 = arith.constant 8 : i32
      %c0_72 = arith.constant 0 : index
      %c0_73 = arith.constant 0 : index
      %318 = vector.load %arg7[%c0_72, %c0_73] : memref<8x128xf32, #tpu.memory_space<vmem>>, vector<8x128xf32>
      tpu.vector_store %arg7[%c0_72, %c0_73], %317 {strides = array<i32>} : memref<8x128xf32, #tpu.memory_space<vmem>>, vector<8x128xf32>,
    } else {
    }
    return
  }
  func.func @transform_0(%arg0: i32, %arg1: i32, %arg2: memref<1xi32, #tpu.memory_space<smem>>) -> (i32, i32) {
    %c0_i32 = arith.constant 0 : i32
    %c0_i32_0 = arith.constant 0 : i32
    return %arg0, %c0_i32 : i32, i32
  }
  func.func @transform_1(%arg0: i32, %arg1: i32, %arg2: memref<1xi32, #tpu.memory_space<smem>>) -> (i32, i32, i32) {
    %0 = arith.index_cast %arg0 : i32 to index
    %1 = memref.load %arg2[%0] : memref<1xi32, #tpu.memory_space<smem>>
    %c1_i32 = arith.constant 1 : i32
    %2 = arith.subi %1, %c1_i32 : i32
    %3 = arith.minsi %arg1, %2 : i32
    %c0_i32 = arith.constant 0 : i32
    %c0_i32_0 = arith.constant 0 : i32
    return %3, %arg0, %c0_i32 : i32, i32, i32
  }
  func.func @transform_2(%arg0: i32, %arg1: i32, %arg2: memref<1xi32, #tpu.memory_space<smem>>) -> (i32, i32) {
    %c0_i32 = arith.constant 0 : i32
    %c0_i32_0 = arith.constant 0 : i32
    %c0_i32_1 = arith.constant 0 : i32
    return %c0_i32, %c0_i32_0 : i32, i32
  }
  func.func @transform_3(%arg0: i32, %arg1: i32, %arg2: memref<1xi32, #tpu.memory_space<smem>>) -> (i32, i32) {
    %c0_i32 = arith.constant 0 : i32
    %c0_i32_0 = arith.constant 0 : i32
    %c0_i32_1 = arith.constant 0 : i32
    return %c0_i32, %c0_i32_0 : i32, i32
  }
  func.func @transform_4(%arg0: i32, %arg1: i32, %arg2: memref<1xi32, #tpu.memory_space<smem>>) -> (i32, i32) {
    %c0_i32 = arith.constant 0 : i32
    %c0_i32_0 = arith.constant 0 : i32
    return %arg0, %c0_i32 : i32, i32
  }
}

</mosaic_0001>

<bundles_post_ra>
// kernel: tpu_custom_call.1
= control target key start
LH: loop header
LB: loop body
LE: loop exit
PB: predicated region body
PF: predicated region fallthrough
CT: control target
= control target key end

     0   :  { %11 = vsyncpa [#allocation5], 0  ;;  %s2080_s0 = inlined_call_operand.<no memory space> [shape: s32[1], index: 0, kind: input, shape index: {}]   ;;  %s2081_s1 = inlined_call_operand.vmem [shape: s32[8,1], index: 1, kind: input, shape index: {}]   ;;  %s2082_s2 = inlined_call_operand.hbm [shape: f32[8,8,384], index: 2, kind: input, shape index: {}]   ;;  %s2083_s3 = inlined_call_operand.hbm [shape: f32[128,384], index: 3, kind: input, shape index: {}]   ;;  %s2084_s4 = inlined_call_operand.vmem [shape: f32[1,384], index: 4, kind: input, shape index: {}]   ;;  %s2085_s5 = inlined_call_operand.hbm [shape: f32[8,128], index: 5, kind: output, shape index: {}]  }
   0x1   :  { %12 = vsyncpa [#allocation8], 0 }
   0x2   :  { %13 = vsyncpa [#allocation6], 0  ;;  %s1113_s20 = sadd.s32 4294967295, %s2080_s0  ;;  %s1362_s21 = smov [#allocation4]  }
   0x3   :  { %p1114_p0 = scmp.gt.s32.totalorder %s1113_s20, 0  ;;  %s30_s22 = sshll.u32 %s1362_s21, 4  ;;  %s31_s22 = int_to_ptr.vmem [resolvable:$true] %s30_s22 }
   0x4   :  { %s41_s25 = sshll.u32 %s2083_s3, 4  ;;  %s1363_s30 = smov [#allocation7]   ;;  %s42_s25 = int_to_ptr.hbm [resolvable:$true] %s41_s25 }
   0x5   :  { %s2144_s20 = smov (%p1114_p0, %s1113_s20), 0  ;;  %s43_s6 = sshll.u32 %s1363_s30, 4  ;;  %s44_s6 = int_to_ptr.vmem [resolvable:$true] %s43_s6 }
   0x6   :  { %s1144_s26 = smul.u32 192, %s2144_s20  ;;  %s1288_s12 = scalar_lea.hbm %s2082_s2, 192 }
   0x8   :  { %s27_s29 = scalar_lea.hbm %s2082_s2, %s1144_s26 }
   0x9   :  { %s28_s7 = sshll.u32 %s27_s29, 4  ;;  %s29_s7 = int_to_ptr.hbm [resolvable:$true] %s28_s7 }
   0xa   :  { %s1284_s8 = sshra.s32 %s29_s7, 4  ;;  %s1285_s8 = int_to_ptr.hbm [resolvable:$true] %s1284_s8 }
   0xb   :  { %s1286_s9 = scalar_lea.hbm %s1285_s8, 192  ;;  %p1289_p2 = scmp.lt.s32.totalorder %s1285_s8, %s2082_s2 }
   0xc   :  { %p1287_p1 = scmp.ne.s32.totalorder %s1285_s8, %s1286_s9  ;;  %p1290_p3 = scmp.lt.s32.totalorder %s1288_s12, %s1286_s9 }
   0xe   :  { %p1291_p4 = por %p1290_p3, %p1289_p2 }
  0x10   :  { %p1292_p5 = pnand %p1291_p4, %p1287_p1 }
  0x12   :  { %1295 = shalt.err (!%p1292_p5)
}
  0x13   :  { %s1364_s14 = smov 384   ;;  %s1365_s15 = smov 24  }
  0x14   :  { %36 = dma.hbm_to_vmem [thread:$0]  %s29_s7, 3072, %s31_s22, [#allocation5], %s1364_s14, %s1364_s14, %s1365_s15  }
  0x15   :  { %49 = dma.hbm_to_vmem [thread:$0]  %s42_s25, 6144, %s44_s6, [#allocation8], %s1364_s14, %s1364_s14, %s1365_s15  }
  0x16   :  { %1356 = dma.done.wait [#allocation5], 3072  }
  0x17   :  { %1357 = vsyncadd [#allocation5], 4294964224 }
  0x18   :  { %1358 = dma.done.wait [#allocation8], 6144  }
  0x19   :  { %1359 = vsyncadd [#allocation8], 4294961152  ;;  %v1366_v0 = vmov 0.0   ;;  %p1119_p6 = scmp.le.s32.totalorder %s2080_s0, 0 }
  0x1a   :  { %69 = vst [vmem:[#allocation9] sm:$0xff] %v1366_v0 }
  0x1b   :  { %74 = sbr.rel (%p1119_p6) target bundleno = 1481 (0x5c9), region = 33 }
  0x20   :  { %v1417_v1 = vld [vmem:[#allocation7 + $0x168] sm:$0xff]  ;;  %v1419_v2 = vld [vmem:[#allocation7 + $0x170] sm:$0xff]  ;;  %v1425_v4 = vld [vmem:[#allocation7 + $0x158] sm:$0xff]  ;;  %v2086_v20 = vmov 0  }
  0x21   :  { %v1421_v3 = vld [vmem:[#allocation7 + $0x150] sm:$0xff]  ;;  %137 = vmatpush.msra.mxu0 %v1417_v1  ;;  %157 = vmatpush.msra.mxu1 %v1419_v2  ;;  %v1427_v5 = vld [vmem:[#allocation7 + $0x138] sm:$0xff]  ;;  %v1429_v6 = vld [vmem:[#allocation7 + $0x140] sm:$0xff] }
  0x22   :  { %256 = vmatpush.msra.mxu3 %v1417_v1  ;;  %v1434_v7 = vld [vmem:[#allocation7 + $0x120] sm:$0xff]  ;;  %v1436_v8 = vld [vmem:[#allocation7 + $0x128] sm:$0xff]  ;;  %v1443_v10 = vld [vmem:[#allocation7 + $0x110] sm:$0xff]  ;;  %1152 = vset.pattern.permute.xlu0 %v2086_v20 }
  0x23   :  { %138 = vmatpush.msra.mxu0 %v1421_v3  ;;  %158 = vmatpush.msra.mxu1 %v1425_v4  ;;  %v1441_v9 = vld [vmem:[#allocation7 + $0x108] sm:$0xff]  ;;  %v1448_v11 = vld [vmem:[#allocation7 + $0xf0] sm:$0xff]  ;;  %v1450_v12 = vld [vmem:[#allocation7 + $0xf8] sm:$0xff] }
  0x24   :  { %257 = vmatpush.msra.mxu3 %v1421_v3  ;;  %v1452_v13 = vld [vmem:[#allocation7 + $0x178] sm:$0xff]  ;;  %v1457_v14 = vld [vmem:[#allocation7 + $0x160] sm:$0xff]  ;;  %v1467_v17 = vld [vmem:[#allocation7 + $0x148] sm:$0xff]  ;;  %1153 = vset.pattern.permute.xlu1 %v2086_v20 }
  0x25   :  { %139 = vmatpush.msra.mxu0 %v1427_v5  ;;  %159 = vmatpush.msra.mxu1 %v1429_v6  ;;  %v1459_v15 = vld [vmem:[#allocation7 + $0xd8] sm:$0xff]  ;;  %v1461_v16 = vld [vmem:[#allocation7 + $0xe0] sm:$0xff]  ;;  %v1471_v19 = vld [vmem:[#allocation7 + $0xc8] sm:$0xff] }
  0x26   :  { %258 = vmatpush.msra.mxu3 %v1427_v5  ;;  %177 = vmatpush.msra.mxu2 %v1452_v13  ;;  %v1469_v18 = vld [vmem:[#allocation7 + $0xc0] sm:$0xff]  ;;  %v1477_v21 = vld [vmem:[#allocation7 + $0x130] sm:$0xff]  ;;  %v1479_v22 = vld [vmem:[#allocation7 + $0xa8] sm:$0xff] }
  0x27   :  { %140 = vmatpush.msra.mxu0 %v1434_v7  ;;  %160 = vmatpush.msra.mxu1 %v1436_v8  ;;  %v1481_v23 = vld [vmem:[#allocation7 + $0xb0] sm:$0xff]  ;;  %v1487_v24 = vld [vmem:[#allocation7 + $0x118] sm:$0xff]  ;;  %v1497_v27 = vld [vmem:[%s2081_s1] sm:$0xff] }
  0x28   :  { %259 = vmatpush.msra.mxu3 %v1434_v7  ;;  %178 = vmatpush.msra.mxu2 %v1457_v14  ;;  %v1489_v25 = vld [vmem:[#allocation7 + $0x90] sm:$0xff]  ;;  %v1491_v26 = vld [vmem:[#allocation7 + $0x98] sm:$0xff]  ;;  %2110 = vst [vmem:[#allocation13_spill] sm:$0xff] %v1497_v27  ;;  %v1502_v28 = vld [vmem:[#allocation7 + $0x100] sm:$0xff]  ;;  %vm1122_vm0 = vcmp.gt.s32.totalorder %v1497_v27, 0  ;;  %vm1125_vm1 = vcmp.gt.s32.totalorder %v1497_v27, 1 }
  0x29   :  { %141 = vmatpush.msra.mxu0 %v1441_v9  ;;  %161 = vmatpush.msra.mxu1 %v1443_v10  ;;  %v1505_v29 = vld [vmem:[#allocation7 + $0x78] sm:$0xff]  ;;  %v1507_v30 = vld [vmem:[#allocation7 + $0x80] sm:$0xff]  ;;  %v246_v31 = vsel %vm1122_vm0, 1, %v2086_v20  ;;  %v1514_v32 = vld [vmem:[#allocation7 + $0xe8] sm:$0xff]  ;;  %v366_v42 = vsel %vm1125_vm1, 1, %v2086_v20  ;;  %vm1140_vm2 = vcmp.gt.s32.totalorder %v1497_v27, 6 }
  0x2a   :  { %260 = vmatpush.msra.mxu3 %v1441_v9  ;;  %179 = vmatpush.msra.mxu2 %v1467_v17  ;;  %v1516_v33 = vld [vmem:[#allocation7 + $0x60] sm:$0xff]  ;;  %v1518_v34 = vld [vmem:[#allocation7 + $0x68] sm:$0xff]  ;;  %v1523_v35 = vld [vmem:[#allocation7 + $0xd0] sm:$0xff]  ;;  %v966_v51 = vsel %vm1140_vm2, 1, %v2086_v20 }
  0x2b   :  { %142 = vmatpush.msra.mxu0 %v1448_v11  ;;  %162 = vmatpush.msra.mxu1 %v1450_v12  ;;  %v1525_v36 = vld [vmem:[#allocation7 + $0x48] sm:$0xff]  ;;  %v1527_v37 = vld [vmem:[#allocation7 + $0x50] sm:$0xff]  ;;  %v1534_v38 = vld [vmem:[#allocation7 + $0xb8] sm:$0xff] }
  0x2c   :  { %261 = vmatpush.msra.mxu3 %v1448_v11  ;;  %180 = vmatpush.msra.mxu2 %v1477_v21  ;;  %v1536_v39 = vld [vmem:[#allocation7 + $0x30] sm:$0xff]  ;;  %v1538_v40 = vld [vmem:[#allocation7 + $0x38] sm:$0xff]  ;;  %v1544_v41 = vld [vmem:[#allocation7 + $0xa0] sm:$0xff] }
  0x2d   :  { %143 = vmatpush.msra.mxu0 %v1459_v15  ;;  %163 = vmatpush.msra.mxu1 %v1461_v16  ;;  %2111 = vst [vmem:[#allocation14_spill] sm:$0xff] %v1536_v39  ;;  %v1547_v43 = vld [vmem:[#allocation7 + $0x18] sm:$0xff]  ;;  %v1549_v44 = vld [vmem:[#allocation7 + $0x20] sm:$0xff]  ;;  %v1555_v45 = vld [vmem:[#allocation7 + $0x88] sm:$0xff] }
  0x2e   :  { %262 = vmatpush.msra.mxu3 %v1459_v15  ;;  %181 = vmatpush.msra.mxu2 %v1487_v24  ;;  %2112 = vst [vmem:[#allocation15_spill] sm:$0xff] %v1538_v40  ;;  %v1557_v46 = vld [vmem:[#allocation7] sm:$0xff]  ;;  %v1559_v47 = vld [vmem:[#allocation7 + $0x8] sm:$0xff]  ;;  %v1567_v49 = vld [vmem:[#allocation7 + $0x70] sm:$0xff] }
  0x2f   :  { %144 = vmatpush.msra.mxu0 %v1469_v18  ;;  %164 = vmatpush.msra.mxu1 %v1471_v19  ;;  %2113 = vst [vmem:[#allocation16_spill] sm:$0xff] %v1547_v43  ;;  %v1564_v48 = vld [vmem:[#allocation9] sm:$0xff]  ;;  %v1575_v50 = vld [vmem:[#allocation7 + $0x58] sm:$0xff]  ;;  %v1586_v53 = vld [vmem:[#allocation7 + $0x28] sm:$0xff] }
  0x30   :  { %263 = vmatpush.msra.mxu3 %v1469_v18  ;;  %182 = vmatpush.msra.mxu2 %v1502_v28  ;;  %2114 = vst [vmem:[#allocation17_spill] sm:$0xff] %v1549_v44  ;;  %v1580_v52 = vld [vmem:[#allocation7 + $0x40] sm:$0xff]  ;;  %v1591_v54 = vld [vmem:[#allocation7 + $0x10] sm:$0xff]  ;;  %v87_v60 = vld [vmem:[#allocation4 + $0x8] sm:$0xff] }
  0x31   :  { %145 = vmatpush.msra.mxu0 %v1479_v22  ;;  %165 = vmatpush.msra.mxu1 %v1481_v23  ;;  %2115 = vst [vmem:[#allocation18_spill] sm:$0xff] %v1557_v46  ;;  %v76_v55 = vld [vmem:[%s2084_s4] sm:$0x7] }
  0x32   :  { %248 = vperm.xlu0 %1152, %v246_v31   ;;  %183 = vmatpush.msra.mxu2 %v1514_v32  ;;  %2116 = vst [vmem:[#allocation19_spill] sm:$0xff] %v1559_v47  ;;  %v1711_v56 = vperm.slane %v76_v55, 0  ;;  %v1713_v57 = vperm.slane %v76_v55, 1  ;;  %v86_v58 = vld [vmem:[#allocation4] sm:$0xff] }
  0x33   :  { %146 = vmatpush.msra.mxu0 %v1489_v25  ;;  %166 = vmatpush.msra.mxu1 %v1491_v26  ;;  %2117 = vst [vmem:[#allocation20_spill] sm:$0xff] %v1586_v53 }
  0x34   :  { %264 = vmatpush.msra.mxu3 %v1479_v22  ;;  %184 = vmatpush.msra.mxu2 %v1523_v35  ;;  %2118 = vst [vmem:[#allocation21_spill] sm:$0xff] %v1591_v54 }
  0x35   :  { %147 = vmatpush.msra.mxu0 %v1505_v29  ;;  %167 = vmatpush.msra.mxu1 %v1507_v30  ;;  %2119 = vst [vmem:[#allocation22_spill] sm:$0xff] %v1711_v56 }
  0x36   :  { %265 = vmatpush.msra.mxu3 %v1489_v25  ;;  %185 = vmatpush.msra.mxu2 %v1534_v38  ;;  %2120 = vst [vmem:[#allocation23_spill] sm:$0xff] %v1713_v57 }
  0x37   :  { %148 = vmatpush.msra.mxu0 %v1516_v33  ;;  %168 = vmatpush.msra.mxu1 %v1518_v34 }
  0x38   :  { %266 = vmatpush.msra.mxu3 %v1505_v29  ;;  %186 = vmatpush.msra.mxu2 %v1544_v41 }
  0x39   :  { %149 = vmatpush.msra.mxu0 %v1525_v36  ;;  %169 = vmatpush.msra.mxu1 %v1527_v37 }
  0x3a   :  { %368 = vperm.xlu0 %1152, %v366_v42   ;;  %187 = vmatpush.msra.mxu2 %v1555_v45 }
  0x3b   :  { %150 = vmatpush.msra.mxu0 %v1536_v39  ;;  %170 = vmatpush.msra.mxu1 %v1538_v40 }
  0x3c   :  { %267 = vmatpush.msra.mxu3 %v1516_v33  ;;  %188 = vmatpush.msra.mxu2 %v1567_v49 }
  0x3d   :  { %151 = vmatpush.msra.mxu0 %v1547_v43  ;;  %171 = vmatpush.msra.mxu1 %v1549_v44 }
  0x3e   :  { %268 = vmatpush.msra.mxu3 %v1525_v36  ;;  %189 = vmatpush.msra.mxu2 %v1575_v50 }
  0x3f   :  { %152 = vmatpush.msra.mxu0 %v1557_v46  ;;  %172 = vmatpush.msra.mxu1 %v1559_v47 }
  0x40   :  { %153 = vmatmul.f32.vlgmr.msra.gmra.mxu0 %v1564_v48  ;;  %173 = vmatmul.f32.vlgmr.msra.gmra.mxu1 %v1564_v48 }
  0x41   :  { %276 = vmatpush.msrb.mxu0 %v1419_v2  ;;  %296 = vmatpush.msrb.mxu1 %v1452_v13 }
  0x42   :  { %968 = vperm.xlu0 %1152, %v966_v51   ;;  %190 = vmatpush.msra.mxu2 %v1580_v52 }
  0x43   :  { %277 = vmatpush.msrb.mxu0 %v1425_v4  ;;  %297 = vmatpush.msrb.mxu1 %v1457_v14 }
  0x44   :  { %269 = vmatpush.msra.mxu3 %v1536_v39  ;;  %191 = vmatpush.msra.mxu2 %v1586_v53 }
  0x45   :  { %278 = vmatpush.msrb.mxu0 %v1429_v6  ;;  %298 = vmatpush.msrb.mxu1 %v1467_v17 }
  0x46   :  { %270 = vmatpush.msra.mxu3 %v1547_v43  ;;  %192 = vmatpush.msra.mxu2 %v1591_v54 }
  0x47   :  { %279 = vmatpush.msrb.mxu0 %v1436_v8  ;;  %299 = vmatpush.msrb.mxu1 %v1477_v21 }
  0x48   :  { %193 = vmatmul.f32.vlgmr.msra.gmra.mxu2 %v1564_v48  ;;  %271 = vmatpush.msra.mxu3 %v1557_v46 }
  0x49   :  { %280 = vmatpush.msrb.mxu0 %v1443_v10  ;;  %300 = vmatpush.msrb.mxu1 %v1487_v24 }
  0x4a   :  { %376 = vmatpush.msrb.mxu2 %v1417_v1  ;;  %396 = vmatpush.msrb.mxu3 %v1419_v2 }
  0x4b   :  { %281 = vmatpush.msrb.mxu0 %v1450_v12  ;;  %301 = vmatpush.msrb.mxu1 %v1502_v28 }
  0x4c   :  { %377 = vmatpush.msrb.mxu2 %v1421_v3  ;;  %397 = vmatpush.msrb.mxu3 %v1425_v4 }
  0x4d   :  { %282 = vmatpush.msrb.mxu0 %v1461_v16  ;;  %302 = vmatpush.msrb.mxu1 %v1514_v32 }
  0x4e   :  { %378 = vmatpush.msrb.mxu2 %v1427_v5  ;;  %398 = vmatpush.msrb.mxu3 %v1429_v6 }
  0x4f   :  { %283 = vmatpush.msrb.mxu0 %v1471_v19  ;;  %303 = vmatpush.msrb.mxu1 %v1523_v35 }
  0x50   :  { %379 = vmatpush.msrb.mxu2 %v1434_v7  ;;  %399 = vmatpush.msrb.mxu3 %v1436_v8 }
  0x51   :  { %284 = vmatpush.msrb.mxu0 %v1481_v23  ;;  %304 = vmatpush.msrb.mxu1 %v1534_v38 }
  0x52   :  { %380 = vmatpush.msrb.mxu2 %v1441_v9  ;;  %400 = vmatpush.msrb.mxu3 %v1443_v10 }
  0x53   :  { %285 = vmatpush.msrb.mxu0 %v1491_v26  ;;  %305 = vmatpush.msrb.mxu1 %v1544_v41 }
  0x54   :  { %381 = vmatpush.msrb.mxu2 %v1448_v11  ;;  %401 = vmatpush.msrb.mxu3 %v1450_v12 }
  0x55   :  { %286 = vmatpush.msrb.mxu0 %v1507_v30  ;;  %306 = vmatpush.msrb.mxu1 %v1555_v45 }
  0x56   :  { %382 = vmatpush.msrb.mxu2 %v1459_v15  ;;  %402 = vmatpush.msrb.mxu3 %v1461_v16 }
  0x57   :  { %287 = vmatpush.msrb.mxu0 %v1518_v34  ;;  %307 = vmatpush.msrb.mxu1 %v1567_v49 }
  0x58   :  { %383 = vmatpush.msrb.mxu2 %v1469_v18  ;;  %403 = vmatpush.msrb.mxu3 %v1471_v19 }
  0x59   :  { %288 = vmatpush.msrb.mxu0 %v1527_v37  ;;  %308 = vmatpush.msrb.mxu1 %v1575_v50 }
  0x5a   :  { %384 = vmatpush.msrb.mxu2 %v1479_v22  ;;  %404 = vmatpush.msrb.mxu3 %v1481_v23 }
  0x5b   :  { %289 = vmatpush.msrb.mxu0 %v1538_v40  ;;  %309 = vmatpush.msrb.mxu1 %v1580_v52 }
  0x5c   :  { %385 = vmatpush.msrb.mxu2 %v1489_v25  ;;  %405 = vmatpush.msrb.mxu3 %v1491_v26 }
  0x5d   :  { %290 = vmatpush.msrb.mxu0 %v1549_v44  ;;  %310 = vmatpush.msrb.mxu1 %v1586_v53 }
  0x5e   :  { %386 = vmatpush.msrb.mxu2 %v1505_v29  ;;  %406 = vmatpush.msrb.mxu3 %v1507_v30 }
  0x5f   :  { %291 = vmatpush.msrb.mxu0 %v1559_v47  ;;  %311 = vmatpush.msrb.mxu1 %v1591_v54 }
  0x60   :  { %387 = vmatpush.msrb.mxu2 %v1516_v33  ;;  %407 = vmatpush.msrb.mxu3 %v1518_v34 }
  0x61   :  { %416 = vmatpush.msra.mxu0 %v1452_v13  ;;  %496 = vmatpush.msra.mxu1 %v1417_v1 }
  0x62   :  { %388 = vmatpush.msrb.mxu2 %v1525_v36  ;;  %408 = vmatpush.msrb.mxu3 %v1527_v37 }
  0x63   :  { %417 = vmatpush.msra.mxu0 %v1457_v14  ;;  %497 = vmatpush.msra.mxu1 %v1421_v3 }
  0x64   :  { %389 = vmatpush.msrb.mxu2 %v1536_v39  ;;  %409 = vmatpush.msrb.mxu3 %v1538_v40 }
  0x65   :  { %418 = vmatpush.msra.mxu0 %v1467_v17  ;;  %498 = vmatpush.msra.mxu1 %v1427_v5 }
  0x66   :  { %390 = vmatpush.msrb.mxu2 %v1547_v43  ;;  %410 = vmatpush.msrb.mxu3 %v1549_v44 }
  0x67   :  { %419 = vmatpush.msra.mxu0 %v1477_v21  ;;  %499 = vmatpush.msra.mxu1 %v1434_v7 }
  0x68   :  { %391 = vmatpush.msrb.mxu2 %v1557_v46  ;;  %411 = vmatpush.msrb.mxu3 %v1559_v47 }
  0x69   :  { %420 = vmatpush.msra.mxu0 %v1487_v24  ;;  %500 = vmatpush.msra.mxu1 %v1441_v9 }
  0x6a   :  { %516 = vmatpush.msra.mxu2 %v1419_v2  ;;  %1154 = vset.pattern.permute.xlu2 %v2086_v20 }
  0x6b   :  { %421 = vmatpush.msra.mxu0 %v1502_v28  ;;  %501 = vmatpush.msra.mxu1 %v1448_v11 }
  0x6c   :  { %517 = vmatpush.msra.mxu2 %v1425_v4 }
  0x6d   :  { %422 = vmatpush.msra.mxu0 %v1514_v32  ;;  %502 = vmatpush.msra.mxu1 %v1459_v15 }
  0x6e   :  { %518 = vmatpush.msra.mxu2 %v1429_v6 }
  0x6f   :  { %423 = vmatpush.msra.mxu0 %v1523_v35  ;;  %503 = vmatpush.msra.mxu1 %v1469_v18 }
  0x70   :  { %519 = vmatpush.msra.mxu2 %v1436_v8 }
  0x71   :  { %424 = vmatpush.msra.mxu0 %v1534_v38  ;;  %504 = vmatpush.msra.mxu1 %v1479_v22 }
  0x72   :  { %520 = vmatpush.msra.mxu2 %v1443_v10 }
  0x73   :  { %425 = vmatpush.msra.mxu0 %v1544_v41  ;;  %505 = vmatpush.msra.mxu1 %v1489_v25 }
  0x74   :  { %521 = vmatpush.msra.mxu2 %v1450_v12 }
  0x75   :  { %426 = vmatpush.msra.mxu0 %v1555_v45  ;;  %506 = vmatpush.msra.mxu1 %v1505_v29 }
  0x76   :  { %522 = vmatpush.msra.mxu2 %v1461_v16 }
  0x77   :  { %427 = vmatpush.msra.mxu0 %v1567_v49  ;;  %507 = vmatpush.msra.mxu1 %v1516_v33 }
  0x78   :  { %523 = vmatpush.msra.mxu2 %v1471_v19 }
  0x79   :  { %428 = vmatpush.msra.mxu0 %v1575_v50  ;;  %508 = vmatpush.msra.mxu1 %v1525_v36 }
  0x7a   :  { %524 = vmatpush.msra.mxu2 %v1481_v23 }
  0x7b   :  { %429 = vmatpush.msra.mxu0 %v1580_v52  ;;  %509 = vmatpush.msra.mxu1 %v1536_v39 }
  0x7c   :  { %525 = vmatpush.msra.mxu2 %v1491_v26 }
  0x7d   :  { %430 = vmatpush.msra.mxu0 %v1586_v53  ;;  %510 = vmatpush.msra.mxu1 %v1547_v43 }
  0x7e   :  { %526 = vmatpush.msra.mxu2 %v1507_v30 }
  0x7f   :  { %431 = vmatpush.msra.mxu0 %v1591_v54  ;;  %511 = vmatpush.msra.mxu1 %v1557_v46 }
  0x80   :  { %527 = vmatpush.msra.mxu2 %v1518_v34 }
  0x82   :  { %528 = vmatpush.msra.mxu2 %v1527_v37 }
  0x84   :  { %529 = vmatpush.msra.mxu2 %v1538_v40  ;;  %v1717_v40 = vperm.slane %v76_v55, 2 }
  0x86   :  { %530 = vmatpush.msra.mxu2 %v1549_v44 }
  0x88   :  { %531 = vmatpush.msra.mxu2 %v1559_v47 }
  0xbd   :  { %v154_v59 = vpop.f32.mrf.mxu0  ;;  %v174_v61 = vpop.f32.mrf.mxu1 }
  0xbe   :  { %v155_v62 = vadd.f32 %v154_v59, %v1711_v56  ;;  %v175_v63 = vadd.f32 %v174_v61, %v1713_v57 }
  0xc0   :  { %v197_v0 = vadd.f32 %v155_v62, %v86_v58  ;;  %v217_v31 = vadd.f32 %v175_v63, %v87_v60 }
  0xc2   :  { %v1120_v42 = vmul.f32 -1.442695, %v197_v0  ;;  %v1121_v51 = vmul.f32 -1.442695, %v217_v31 }
  0xc4   :  { %1155 = vpow2.f32 %v1120_v42 }
  0xc5   :  { %1157 = vpow2.f32 %v1121_v51  ;;  %v88_v51 = vld [vmem:[#allocation4 + $0x10] sm:$0xff] }
  0xca   :  { %v1156_v20 = vpop.eup %1155 }
  0xcb   :  { %v1158_v27 = vpop.eup %1157  ;;  %v201_v47 = vadd.f32 1.0, %v1156_v20  ;;  %v194_v58 = vpop.f32.mrf.mxu2 }
  0xcc   :  { %v221_v46 = vadd.f32 1.0, %v1158_v27  ;;  %v195_v31 = vadd.f32 %v194_v58, %v1717_v40 }
  0xcd   :  { %1159 = vrcp.f32 %v201_v47  ;;  %v213_v60 = vand.u32 2147483648, %v201_v47  ;;  %v211_v63 = vand.u32 2147483647, %v201_v47  ;;  %vm207_vm4 = vweird.f32 %v201_v47 }
  0xce   :  { %1161 = vrcp.f32 %v221_v46  ;;  %vm227_vm7 = vweird.f32 %v221_v46  ;;  %v231_v57 = vand.u32 2147483647, %v221_v46 }
  0xcf   :  { %v214_v27 = vor.u32 1.1754944e-38, %v213_v60  ;;  %vm212_vm6 = vcmp.eq.f32.partialorder %v211_v63, 8.507059e+37  ;;  %v249_v63 = vpop.permute.xlu0 %248 }
  0xd0   :  { %vm232_vm10 = vcmp.eq.f32.partialorder %v231_v57, 8.507059e+37  ;;  %vm250_vm11 = vcmp.eq.s32.totalorder %v249_v63, 1  ;;  %v2126_v57 = vld [vmem:[#allocation21_spill] sm:$0xff] }
  0xd3   :  { %v1160_v54 = vpop.eup %1159 }
  0xd4   :  { %v1162_v44 = vpop.eup %1161  ;;  %v203_v43 = vmul.f32 %v1160_v54, %v201_v47  ;;  %vm208_vm3 = vweird.f32 %v1160_v54 }
  0xd5   :  { %v223_v53 = vmul.f32 %v1162_v44, %v221_v46  ;;  %vm209_vm5 = vmor %vm207_vm4, %vm208_vm3  ;;  %vm228_vm8 = vweird.f32 %v1162_v44 }
  0xd6   :  { %v204_v59 = vsub.f32 1.0, %v203_v43  ;;  %vm229_vm9 = vmor %vm227_vm7, %vm228_vm8 }
  0xd7   :  { %v224_v61 = vsub.f32 1.0, %v223_v53  ;;  %v233_v53 = vand.u32 2147483648, %v221_v46  ;;  %v2123_v46 = vld [vmem:[#allocation20_spill] sm:$0xff] }
  0xd8   :  { %v205_v62 = vmul.f32 %v1160_v54, %v204_v59 }
  0xd9   :  { %v225_v0 = vmul.f32 %v1162_v44, %v224_v61  ;;  %v234_v61 = vor.u32 1.1754944e-38, %v233_v53 }
  0xda   :  { %v206_v20 = vadd.f32 %v1160_v54, %v205_v62 }
  0xdb   :  { %v226_v55 = vadd.f32 %v1162_v44, %v225_v0 }
  0xdc   :  { %v210_v42 = vsel %vm209_vm5, %v1160_v54, %v206_v20 }
  0xdd   :  { %v215_v56 = vsel %vm212_vm6, %v214_v27, %v210_v42  ;;  %v230_v39 = vsel %vm229_vm9, %v1162_v44, %v226_v55  ;;  %v2122_v44 = vld [vmem:[#allocation15_spill] sm:$0xff]  ;;  %v254_v42 = vld [vmem:[#allocation4 + $0x20] sm:$0xff] }
  0xde   :  { %v237_v43 = vmul.f32 %v215_v56, %v195_v31  ;;  %v235_v58 = vsel %vm232_vm10, %v234_v61, %v230_v39  ;;  %v2121_v39 = vld [vmem:[#allocation14_spill] sm:$0xff]  ;;  %v2125_v56 = vld [vmem:[#allocation17_spill] sm:$0xff]  ;;  %v2128_v27 = vld [vmem:[#allocation19_spill] sm:$0xff] }
  0xdf   :  { %v240_v47 = vsub.f32 1.0, %v235_v58  ;;  %v242_v54 = vmul.f32 %v235_v58, %v1564_v48  ;;  %v2127_v31 = vld [vmem:[#allocation18_spill] sm:$0xff]  ;;  %v2129_v55 = vld [vmem:[#allocation23_spill] sm:$0xff] }
  0xe0   :  { %v238_v59 = vadd.f32 %v237_v43, %v88_v51  ;;  %v253_v61 = vld [vmem:[#allocation4 + $0x18] sm:$0xff] }
  0xe2   :  { %1163 = vtanh.f32 %v238_v59 }
  0xe8   :  { %v1164_v62 = vpop.eup %1163 }
  0xe9   :  { %v241_v60 = vmul.f32 %v1164_v62, %v240_v47  ;;  %v2130_v47 = vld [vmem:[#allocation22_spill] sm:$0xff] }
  0xeb   :  { %v243_v0 = vadd.f32 %v242_v54, %v241_v60 }
  0xed   :  { %v1722_v20 = vsel %vm250_vm11, %v243_v0, %v1564_v48  ;;  %v2124_v48 = vld [vmem:[#allocation16_spill] sm:$0xff] }
  0xee   :  { %272 = vmatmul.f32.vlgmr.msra.gmra.mxu3 %v1722_v20  ;;  %292 = vmatmul.f32.vlgmr.msrb.gmra.mxu0 %v1722_v20 }
  0xef   :  { %312 = vmatmul.f32.vlgmr.msrb.gmra.mxu1 %v1722_v20  ;;  %536 = vmatpush.msra.mxu3 %v1452_v13 }
  0xf0   :  { %616 = vmatpush.msrb.mxu0 %v1417_v1  ;;  %636 = vmatpush.msrb.mxu1 %v1419_v2 }
  0xf1   :  { %537 = vmatpush.msra.mxu3 %v1457_v14 }
  0xf2   :  { %617 = vmatpush.msrb.mxu0 %v1421_v3  ;;  %637 = vmatpush.msrb.mxu1 %v1425_v4 }
  0xf3   :  { %538 = vmatpush.msra.mxu3 %v1467_v17 }
  0xf4   :  { %618 = vmatpush.msrb.mxu0 %v1427_v5  ;;  %638 = vmatpush.msrb.mxu1 %v1429_v6 }
  0xf5   :  { %539 = vmatpush.msra.mxu3 %v1477_v21 }
  0xf6   :  { %619 = vmatpush.msrb.mxu0 %v1434_v7  ;;  %639 = vmatpush.msrb.mxu1 %v1436_v8 }
  0xf7   :  { %540 = vmatpush.msra.mxu3 %v1487_v24 }
  0xf8   :  { %620 = vmatpush.msrb.mxu0 %v1441_v9  ;;  %640 = vmatpush.msrb.mxu1 %v1443_v10 }
  0xf9   :  { %541 = vmatpush.msra.mxu3 %v1502_v28 }
  0xfa   :  { %621 = vmatpush.msrb.mxu0 %v1448_v11  ;;  %641 = vmatpush.msrb.mxu1 %v1450_v12 }
  0xfb   :  { %542 = vmatpush.msra.mxu3 %v1514_v32 }
  0xfc   :  { %622 = vmatpush.msrb.mxu0 %v1459_v15  ;;  %642 = vmatpush.msrb.mxu1 %v1461_v16 }
  0xfd   :  { %543 = vmatpush.msra.mxu3 %v1523_v35 }
  0xfe   :  { %623 = vmatpush.msrb.mxu0 %v1469_v18  ;;  %643 = vmatpush.msrb.mxu1 %v1471_v19 }
  0xff   :  { %544 = vmatpush.msra.mxu3 %v1534_v38 }
 0x100   :  { %624 = vmatpush.msrb.mxu0 %v1479_v22  ;;  %644 = vmatpush.msrb.mxu1 %v1481_v23 }
 0x101   :  { %545 = vmatpush.msra.mxu3 %v1544_v41 }
 0x102   :  { %625 = vmatpush.msrb.mxu0 %v1489_v25  ;;  %645 = vmatpush.msrb.mxu1 %v1491_v26 }
 0x103   :  { %546 = vmatpush.msra.mxu3 %v1555_v45 }
 0x104   :  { %626 = vmatpush.msrb.mxu0 %v1505_v29  ;;  %646 = vmatpush.msrb.mxu1 %v1507_v30 }
 0x105   :  { %547 = vmatpush.msra.mxu3 %v1567_v49 }
 0x106   :  { %627 = vmatpush.msrb.mxu0 %v1516_v33  ;;  %647 = vmatpush.msrb.mxu1 %v1518_v34 }
 0x107   :  { %548 = vmatpush.msra.mxu3 %v1575_v50 }
 0x108   :  { %628 = vmatpush.msrb.mxu0 %v1525_v36  ;;  %648 = vmatpush.msrb.mxu1 %v1527_v37 }
 0x109   :  { %549 = vmatpush.msra.mxu3 %v1580_v52 }
 0x10a   :  { %629 = vmatpush.msrb.mxu0 %v2121_v39  ;;  %649 = vmatpush.msrb.mxu1 %v2122_v44 }
 0x10b   :  { %550 = vmatpush.msra.mxu3 %v2123_v46 }
 0x10c   :  { %630 = vmatpush.msrb.mxu0 %v2124_v48  ;;  %650 = vmatpush.msrb.mxu1 %v2125_v56  ;;  %v2131_v56 = vld [vmem:[#allocation13_spill] sm:$0xff] }
 0x10d   :  { %551 = vmatpush.msra.mxu3 %v2126_v57  ;;  %vm1128_vm12 = vcmp.gt.s32.totalorder %v2131_v56, 2  ;;  %vm1131_vm13 = vcmp.gt.s32.totalorder %v2131_v56, 3  ;;  %vm1143_vm1 = vcmp.gt.s32.totalorder %v2131_v56, 7 }
 0x10e   :  { %631 = vmatpush.msrb.mxu0 %v2127_v31  ;;  %651 = vmatpush.msrb.mxu1 %v2128_v27 }
 0x16b   :  { %v293_v51 = vpop.f32.mrf.mxu0 }
 0x16c   :  { %v294_v43 = vadd.f32 %v293_v51, %v2129_v55  ;;  %v2132_v51 = vmov 0   ;;  %v313_v55 = vpop.f32.mrf.mxu1 }
 0x16e   :  { %v336_v53 = vadd.f32 %v294_v43, %v254_v42  ;;  %v486_v42 = vsel %vm1128_vm12, 1, %v2132_v51 }
 0x16f   :  { %488 = vperm.xlu1 %1153, %v486_v42   ;;  %v314_v42 = vadd.f32 %v313_v55, %v1717_v40 }
 0x170   :  { %v1124_v59 = vmul.f32 -1.442695, %v336_v53 }
 0x171   :  { %v273_v58 = vpop.f32.mrf.mxu3 }
 0x172   :  { %1165 = vpow2.f32 %v1124_v59  ;;  %v274_v62 = vadd.f32 %v273_v58, %v2130_v47 }
 0x174   :  { %v316_v60 = vadd.f32 %v274_v62, %v253_v61  ;;  %v606_v62 = vsel %vm1131_vm13, 1, %v2132_v51 }
 0x176   :  { %v1123_v54 = vmul.f32 -1.442695, %v316_v60 }
 0x177   :  { %608 = vperm.xlu1 %1153, %v606_v62  }
 0x178   :  { %v1166_v63 = vpop.eup %1165  ;;  %1167 = vpow2.f32 %v1123_v54 }
 0x179   :  { %v340_v0 = vadd.f32 1.0, %v1166_v63 }
 0x17b   :  { %1169 = vrcp.f32 %v340_v0  ;;  %vm346_vm4 = vweird.f32 %v340_v0  ;;  %v350_v62 = vand.u32 2147483647, %v340_v0 }
 0x17d   :  { %vm351_vm6 = vcmp.eq.f32.partialorder %v350_v62, 8.507059e+37 }
 0x17e   :  { %v1168_v31 = vpop.eup %1167 }
 0x17f   :  { %v320_v57 = vadd.f32 1.0, %v1168_v31 }
 0x181   :  { %1171 = vrcp.f32 %v320_v57  ;;  %v1170_v27 = vpop.eup %1169  ;;  %v332_v60 = vand.u32 2147483648, %v320_v57  ;;  %v330_v31 = vand.u32 2147483647, %v320_v57  ;;  %vm326_vm15 = vweird.f32 %v320_v57 }
 0x182   :  { %v342_v43 = vmul.f32 %v1170_v27, %v340_v0  ;;  %vm347_vm3 = vweird.f32 %v1170_v27 }
 0x183   :  { %v333_v48 = vor.u32 1.1754944e-38, %v332_v60  ;;  %vm331_vm2 = vcmp.eq.f32.partialorder %v330_v31, 8.507059e+37  ;;  %vm348_vm5 = vmor %vm346_vm4, %vm347_vm3 }
 0x184   :  { %v343_v61 = vsub.f32 1.0, %v342_v43 }
 0x186   :  { %v344_v63 = vmul.f32 %v1170_v27, %v343_v61  ;;  %v1086_v61 = vsel %vm1143_vm1, 1, %v2132_v51 }
 0x187   :  { %v1172_v53 = vpop.eup %1171  ;;  %1088 = vperm.xlu1 %1153, %v1086_v61  }
 0x188   :  { %v322_v59 = vmul.f32 %v1172_v53, %v320_v57  ;;  %vm327_vm14 = vweird.f32 %v1172_v53  ;;  %v345_v44 = vadd.f32 %v1170_v27, %v344_v63 }
 0x189   :  { %vm328_vm0 = vmor %vm326_vm15, %vm327_vm14 }
 0x18a   :  { %v323_v58 = vsub.f32 1.0, %v322_v59  ;;  %v255_v59 = vld [vmem:[#allocation4 + $0x28] sm:$0xff] }
 0x18c   :  { %v324_v54 = vmul.f32 %v1172_v53, %v323_v58  ;;  %v352_v58 = vand.u32 2147483648, %v340_v0 }
 0x18e   :  { %v325_v47 = vadd.f32 %v1172_v53, %v324_v54  ;;  %v349_v54 = vsel %vm348_vm5, %v1170_v27, %v345_v44  ;;  %v353_v60 = vor.u32 1.1754944e-38, %v352_v58 }
 0x190   :  { %v329_v46 = vsel %vm328_vm0, %v1172_v53, %v325_v47  ;;  %v354_v56 = vsel %vm351_vm6, %v353_v60, %v349_v54  ;;  %v369_v53 = vpop.permute.xlu0 %368 }
 0x191   :  { %v334_v43 = vsel %vm331_vm2, %v333_v48, %v329_v46  ;;  %v359_v55 = vsub.f32 1.0, %v354_v56  ;;  %v361_v48 = vmul.f32 %v354_v56, %v1722_v20  ;;  %vm370_vm7 = vcmp.eq.s32.totalorder %v369_v53, 1 }
 0x192   :  { %v356_v39 = vmul.f32 %v334_v43, %v314_v42 }
 0x194   :  { %v357_v57 = vadd.f32 %v356_v39, %v255_v59 }
 0x196   :  { %1173 = vtanh.f32 %v357_v57 }
 0x19c   :  { %v1174_v47 = vpop.eup %1173 }
 0x19d   :  { %v360_v46 = vmul.f32 %v1174_v47, %v359_v55  ;;  %v375_v55 = vld [vmem:[#allocation4 + $0x40] sm:$0xff] }
 0x19f   :  { %v362_v31 = vadd.f32 %v361_v48, %v360_v46 }
 0x1a1   :  { %v1786_v63 = vsel %vm370_vm7, %v362_v31, %v1722_v20 }
 0x1a2   :  { %392 = vmatmul.f32.vlgmr.msrb.gmra.mxu2 %v1786_v63  ;;  %412 = vmatmul.f32.vlgmr.msrb.gmra.mxu3 %v1786_v63 }
 0x1a3   :  { %432 = vmatmul.f32.vlgmr.msra.gmra.mxu0 %v1786_v63  ;;  %656 = vmatpush.msrb.mxu2 %v1452_v13  ;;  %v2141_v13 = vld [vmem:[#allocation22_spill] sm:$0xff] }
 0x1a4   :  { %736 = vmatpush.msrb.mxu3 %v1417_v1  ;;  %756 = vmatpush.msra.mxu0 %v1419_v2  ;;  %v2133_v1 = vld [vmem:[#allocation14_spill] sm:$0xff]  ;;  %v2134_v2 = vld [vmem:[#allocation15_spill] sm:$0xff] }
 0x1a5   :  { %657 = vmatpush.msrb.mxu2 %v1457_v14 }
 0x1a6   :  { %737 = vmatpush.msrb.mxu3 %v1421_v3  ;;  %757 = vmatpush.msra.mxu0 %v1425_v4  ;;  %v2135_v3 = vld [vmem:[#allocation20_spill] sm:$0xff] }
 0x1a7   :  { %658 = vmatpush.msrb.mxu2 %v1467_v17  ;;  %v2136_v4 = vld [vmem:[#allocation16_spill] sm:$0xff] }
 0x1a8   :  { %738 = vmatpush.msrb.mxu3 %v1427_v5  ;;  %758 = vmatpush.msra.mxu0 %v1429_v6  ;;  %v2137_v5 = vld [vmem:[#allocation17_spill] sm:$0xff] }
 0x1a9   :  { %659 = vmatpush.msrb.mxu2 %v1477_v21  ;;  %v2138_v6 = vld [vmem:[#allocation21_spill] sm:$0xff] }
 0x1aa   :  { %739 = vmatpush.msrb.mxu3 %v1434_v7  ;;  %759 = vmatpush.msra.mxu0 %v1436_v8  ;;  %v2139_v7 = vld [vmem:[#allocation18_spill] sm:$0xff]  ;;  %v2140_v8 = vld [vmem:[#allocation19_spill] sm:$0xff] }
 0x1ab   :  { %660 = vmatpush.msrb.mxu2 %v1487_v24 }
 0x1ac   :  { %740 = vmatpush.msrb.mxu3 %v1441_v9  ;;  %760 = vmatpush.msra.mxu0 %v1443_v10  ;;  %v373_v9 = vld [vmem:[#allocation4 + $0x30] sm:$0xff] }
 0x1ad   :  { %661 = vmatpush.msrb.mxu2 %v1502_v28 }
 0x1ae   :  { %741 = vmatpush.msrb.mxu3 %v1448_v11  ;;  %761 = vmatpush.msra.mxu0 %v1450_v12  ;;  %v374_v11 = vld [vmem:[#allocation4 + $0x38] sm:$0xff] }
 0x1af   :  { %662 = vmatpush.msrb.mxu2 %v1514_v32 }
 0x1b0   :  { %742 = vmatpush.msrb.mxu3 %v1459_v15  ;;  %762 = vmatpush.msra.mxu0 %v1461_v16  ;;  %v2142_v15 = vld [vmem:[#allocation23_spill] sm:$0xff] }
 0x1b1   :  { %663 = vmatpush.msrb.mxu2 %v1523_v35 }
 0x1b2   :  { %743 = vmatpush.msrb.mxu3 %v1469_v18  ;;  %763 = vmatpush.msra.mxu0 %v1471_v19 }
 0x1b3   :  { %664 = vmatpush.msrb.mxu2 %v1534_v38 }
 0x1b4   :  { %744 = vmatpush.msrb.mxu3 %v1479_v22  ;;  %764 = vmatpush.msra.mxu0 %v1481_v23 }
 0x1b5   :  { %665 = vmatpush.msrb.mxu2 %v1544_v41 }
 0x1b6   :  { %745 = vmatpush.msrb.mxu3 %v1489_v25  ;;  %765 = vmatpush.msra.mxu0 %v1491_v26 }
 0x1b7   :  { %666 = vmatpush.msrb.mxu2 %v1555_v45 }
 0x1b8   :  { %746 = vmatpush.msrb.mxu3 %v1505_v29  ;;  %766 = vmatpush.msra.mxu0 %v1507_v30 }
 0x1b9   :  { %667 = vmatpush.msrb.mxu2 %v1567_v49 }
 0x1ba   :  { %747 = vmatpush.msrb.mxu3 %v1516_v33  ;;  %767 = vmatpush.msra.mxu0 %v1518_v34 }
 0x1bb   :  { %668 = vmatpush.msrb.mxu2 %v1575_v50 }
 0x1bc   :  { %748 = vmatpush.msrb.mxu3 %v1525_v36  ;;  %768 = vmatpush.msra.mxu0 %v1527_v37 }
 0x1bd   :  { %669 = vmatpush.msrb.mxu2 %v1580_v52 }
 0x1be   :  { %749 = vmatpush.msrb.mxu3 %v2133_v1  ;;  %769 = vmatpush.msra.mxu0 %v2134_v2 }
 0x1bf   :  { %670 = vmatpush.msrb.mxu2 %v2135_v3 }
 0x1c0   :  { %750 = vmatpush.msrb.mxu3 %v2136_v4  ;;  %770 = vmatpush.msra.mxu0 %v2137_v5 }
 0x1c1   :  { %671 = vmatpush.msrb.mxu2 %v2138_v6 }
 0x1c2   :  { %751 = vmatpush.msrb.mxu3 %v2139_v7  ;;  %771 = vmatpush.msra.mxu0 %v2140_v8 }
 0x220   :  { %v433_v61 = vpop.f32.mrf.mxu0 }
 0x221   :  { %v434_v60 = vadd.f32 %v433_v61, %v1717_v40  ;;  %v1906_v61 = vld [vmem:[#allocation7 + $0xc8] sm:$0xff] }
 0x225   :  { %v393_v10 = vpop.f32.mrf.mxu2  ;;  %v413_v12 = vpop.f32.mrf.mxu3 }
 0x226   :  { %v394_v14 = vadd.f32 %v393_v10, %v2141_v13  ;;  %v414_v16 = vadd.f32 %v413_v12, %v2142_v15 }
 0x228   :  { %v436_v18 = vadd.f32 %v394_v14, %v373_v9  ;;  %v456_v19 = vadd.f32 %v414_v16, %v374_v11 }
 0x22a   :  { %v1126_v22 = vmul.f32 -1.442695, %v436_v18  ;;  %v1127_v23 = vmul.f32 -1.442695, %v456_v19  ;;  %v489_v18 = vpop.permute.xlu1 %488 }
 0x22b   :  { %vm490_vm0 = vcmp.eq.s32.totalorder %v489_v18, 1  ;;  %v495_v18 = vld [vmem:[#allocation4 + $0x58] sm:$0xff] }
 0x22c   :  { %1175 = vpow2.f32 %v1126_v22 }
 0x22d   :  { %1177 = vpow2.f32 %v1127_v23 }
 0x232   :  { %v1176_v25 = vpop.eup %1175 }
 0x233   :  { %v1178_v26 = vpop.eup %1177  ;;  %v440_v29 = vadd.f32 1.0, %v1176_v25 }
 0x234   :  { %v460_v30 = vadd.f32 1.0, %v1178_v26  ;;  %v1849_v26 = vld [vmem:[#allocation7 + $0x178] sm:$0xff] }
 0x235   :  { %1179 = vrcp.f32 %v440_v29  ;;  %v452_v42 = vand.u32 2147483648, %v440_v29  ;;  %v450_v58 = vand.u32 2147483647, %v440_v29  ;;  %vm446_vm9 = vweird.f32 %v440_v29 }
 0x236   :  { %1181 = vrcp.f32 %v460_v30  ;;  %v472_v48 = vand.u32 2147483648, %v460_v30  ;;  %vm466_vm13 = vweird.f32 %v460_v30  ;;  %v470_v31 = vand.u32 2147483647, %v460_v30 }
 0x237   :  { %v453_v54 = vor.u32 1.1754944e-38, %v452_v42  ;;  %vm451_vm11 = vcmp.eq.f32.partialorder %v450_v58, 8.507059e+37  ;;  %v1878_v42 = vld [vmem:[#allocation7 + $0x128] sm:$0xff]  ;;  %v1899_v58 = vld [vmem:[#allocation7 + $0xe0] sm:$0xff] }
 0x238   :  { %v473_v11 = vor.u32 1.1754944e-38, %v472_v48  ;;  %vm471_vm15 = vcmp.eq.f32.partialorder %v470_v31, 8.507059e+37 }
 0x23b   :  { %v1180_v20 = vpop.eup %1179 }
 0x23c   :  { %v1182_v39 = vpop.eup %1181  ;;  %v442_v44 = vmul.f32 %v1180_v20, %v440_v29  ;;  %vm447_vm8 = vweird.f32 %v1180_v20  ;;  %v1852_v29 = vld [vmem:[#allocation7 + $0x168] sm:$0xff] }
 0x23d   :  { %v462_v27 = vmul.f32 %v1182_v39, %v460_v30  ;;  %vm448_vm10 = vmor %vm446_vm9, %vm447_vm8  ;;  %vm467_vm12 = vweird.f32 %v1182_v39  ;;  %v1855_v30 = vld [vmem:[#allocation7 + $0x170] sm:$0xff] }
 0x23e   :  { %v443_v0 = vsub.f32 1.0, %v442_v44  ;;  %vm468_vm14 = vmor %vm466_vm13, %vm467_vm12  ;;  %v1868_v44 = vld [vmem:[#allocation7 + $0x138] sm:$0xff] }
 0x23f   :  { %v463_v43 = vsub.f32 1.0, %v462_v27  ;;  %v1871_v27 = vld [vmem:[#allocation7 + $0x140] sm:$0xff] }
 0x240   :  { %v444_v59 = vmul.f32 %v1180_v20, %v443_v0  ;;  %v1875_v0 = vld [vmem:[#allocation7 + $0x120] sm:$0xff] }
 0x241   :  { %v464_v62 = vmul.f32 %v1182_v39, %v463_v43  ;;  %v1885_v43 = vld [vmem:[#allocation7 + $0x110] sm:$0xff] }
 0x242   :  { %v445_v57 = vadd.f32 %v1180_v20, %v444_v59  ;;  %v1892_v59 = vld [vmem:[#allocation7 + $0xf8] sm:$0xff] }
 0x243   :  { %v465_v46 = vadd.f32 %v1182_v39, %v464_v62  ;;  %v1913_v62 = vld [vmem:[#allocation7 + $0xb0] sm:$0xff] }
 0x244   :  { %v449_v56 = vsel %vm448_vm10, %v1180_v20, %v445_v57  ;;  %v1861_v20 = vld [vmem:[#allocation7 + $0x150] sm:$0xff]  ;;  %v1920_v57 = vld [vmem:[#allocation7 + $0x98] sm:$0xff] }
 0x245   :  { %v454_v47 = vsel %vm451_vm11, %v453_v54, %v449_v56  ;;  %v469_v10 = vsel %vm468_vm14, %v1182_v39, %v465_v46  ;;  %v1864_v39 = vld [vmem:[#allocation7 + $0x158] sm:$0xff]  ;;  %v1927_v54 = vld [vmem:[#allocation7 + $0x80] sm:$0xff] }
 0x246   :  { %v476_v53 = vmul.f32 %v454_v47, %v434_v60  ;;  %v474_v12 = vsel %vm471_vm15, %v473_v11, %v469_v10 }
 0x247   :  { %v479_v14 = vsub.f32 1.0, %v474_v12  ;;  %v481_v22 = vmul.f32 %v474_v12, %v1786_v63 }
 0x248   :  { %v477_v9 = vadd.f32 %v476_v53, %v375_v55 }
 0x24a   :  { %1183 = vtanh.f32 %v477_v9 }
 0x250   :  { %v1184_v16 = vpop.eup %1183 }
 0x251   :  { %v480_v19 = vmul.f32 %v1184_v16, %v479_v14 }
 0x253   :  { %v482_v23 = vadd.f32 %v481_v22, %v480_v19 }
 0x255   :  { %v1844_v25 = vsel %vm490_vm0, %v482_v23, %v1786_v63  ;;  %v1858_v63 = vld [vmem:[#allocation7 + $0x160] sm:$0xff] }
 0x256   :  { %512 = vmatmul.f32.vlgmr.msra.gmra.mxu1 %v1844_v25  ;;  %532 = vmatmul.f32.vlgmr.msra.gmra.mxu2 %v1844_v25 }
 0x257   :  { %552 = vmatmul.f32.vlgmr.msra.gmra.mxu3 %v1844_v25  ;;  %776 = vmatpush.msra.mxu1 %v1849_v26 }
 0x258   :  { %856 = vmatpush.msra.mxu2 %v1852_v29  ;;  %876 = vmatpush.msra.mxu3 %v1855_v30 }
 0x259   :  { %777 = vmatpush.msra.mxu1 %v1858_v63 }
 0x25a   :  { %857 = vmatpush.msra.mxu2 %v1861_v20  ;;  %877 = vmatpush.msra.mxu3 %v1864_v39 }
 0x25b   :  { %778 = vmatpush.msra.mxu1 %v1467_v17  ;;  %v1882_v17 = vld [vmem:[#allocation7 + $0x108] sm:$0xff] }
 0x25c   :  { %858 = vmatpush.msra.mxu2 %v1868_v44  ;;  %878 = vmatpush.msra.mxu3 %v1871_v27 }
 0x25d   :  { %779 = vmatpush.msra.mxu1 %v1477_v21  ;;  %v1889_v21 = vld [vmem:[#allocation7 + $0xf0] sm:$0xff] }
 0x25e   :  { %859 = vmatpush.msra.mxu2 %v1875_v0  ;;  %879 = vmatpush.msra.mxu3 %v1878_v42 }
 0x25f   :  { %780 = vmatpush.msra.mxu1 %v1487_v24  ;;  %v1896_v24 = vld [vmem:[#allocation7 + $0xd8] sm:$0xff] }
 0x260   :  { %860 = vmatpush.msra.mxu2 %v1882_v17  ;;  %880 = vmatpush.msra.mxu3 %v1885_v43 }
 0x261   :  { %781 = vmatpush.msra.mxu1 %v1502_v28  ;;  %v1903_v28 = vld [vmem:[#allocation7 + $0xc0] sm:$0xff] }
 0x262   :  { %861 = vmatpush.msra.mxu2 %v1889_v21  ;;  %881 = vmatpush.msra.mxu3 %v1892_v59 }
 0x263   :  { %782 = vmatpush.msra.mxu1 %v1514_v32  ;;  %v1910_v32 = vld [vmem:[#allocation7 + $0xa8] sm:$0xff] }
 0x264   :  { %862 = vmatpush.msra.mxu2 %v1896_v24  ;;  %882 = vmatpush.msra.mxu3 %v1899_v58 }
 0x265   :  { %783 = vmatpush.msra.mxu1 %v1523_v35  ;;  %v1917_v35 = vld [vmem:[#allocation7 + $0x90] sm:$0xff] }
 0x266   :  { %863 = vmatpush.msra.mxu2 %v1903_v28  ;;  %883 = vmatpush.msra.mxu3 %v1906_v61 }
 0x267   :  { %784 = vmatpush.msra.mxu1 %v1534_v38  ;;  %v1924_v38 = vld [vmem:[#allocation7 + $0x78] sm:$0xff] }
 0x268   :  { %864 = vmatpush.msra.mxu2 %v1910_v32  ;;  %884 = vmatpush.msra.mxu3 %v1913_v62 }
 0x269   :  { %785 = vmatpush.msra.mxu1 %v1544_v41 }
 0x26a   :  { %865 = vmatpush.msra.mxu2 %v1917_v35  ;;  %885 = vmatpush.msra.mxu3 %v1920_v57 }
 0x26b   :  { %786 = vmatpush.msra.mxu1 %v1555_v45  ;;  %v494_v45 = vld [vmem:[#allocation4 + $0x50] sm:$0xff] }
 0x26c   :  { %866 = vmatpush.msra.mxu2 %v1924_v38  ;;  %886 = vmatpush.msra.mxu3 %v1927_v54 }
 0x26d   :  { %787 = vmatpush.msra.mxu1 %v1567_v49 }
 0x26e   :  { %867 = vmatpush.msra.mxu2 %v1516_v33  ;;  %887 = vmatpush.msra.mxu3 %v1518_v34  ;;  %v493_v33 = vld [vmem:[#allocation4 + $0x48] sm:$0xff] }
 0x26f   :  { %788 = vmatpush.msra.mxu1 %v1575_v50 }
 0x270   :  { %868 = vmatpush.msra.mxu2 %v1525_v36  ;;  %888 = vmatpush.msra.mxu3 %v1527_v37 }
 0x271   :  { %789 = vmatpush.msra.mxu1 %v1580_v52 }
 0x272   :  { %869 = vmatpush.msra.mxu2 %v2133_v1  ;;  %889 = vmatpush.msra.mxu3 %v2134_v2 }
 0x273   :  { %790 = vmatpush.msra.mxu1 %v2135_v3 }
 0x274   :  { %870 = vmatpush.msra.mxu2 %v2136_v4  ;;  %890 = vmatpush.msra.mxu3 %v2137_v5  ;;  %v1259_v4 = vld [vmem:[%s2081_s1] sm:$0xff] }
 0x275   :  { %791 = vmatpush.msra.mxu1 %v2138_v6  ;;  %vm1134_vm1 = vcmp.gt.s32.totalorder %v1259_v4, 4  ;;  %vm1137_vm2 = vcmp.gt.s32.totalorder %v1259_v4, 5 }
 0x276   :  { %871 = vmatpush.msra.mxu2 %v2139_v7  ;;  %891 = vmatpush.msra.mxu3 %v2140_v8  ;;  %v726_v6 = vsel %vm1134_vm1, 1, %v2132_v51  ;;  %v846_v55 = vsel %vm1137_vm2, 1, %v2132_v51 }
 0x277   :  { %728 = vperm.xlu2 %1154, %v726_v6   ;;  %v613_v6 = vld [vmem:[#allocation4 + $0x60] sm:$0xff] }
 0x27f   :  { %848 = vperm.xlu2 %1154, %v846_v55  }
 0x2d3   :  { %v513_v34 = vpop.f32.mrf.mxu1 }
 0x2d4   :  { %v514_v36 = vadd.f32 %v513_v34, %v2141_v13 }
 0x2d6   :  { %v556_v37 = vadd.f32 %v514_v36, %v493_v33 }
 0x2d8   :  { %v1129_v41 = vmul.f32 -1.442695, %v556_v37 }
 0x2d9   :  { %v533_v49 = vpop.f32.mrf.mxu2 }
 0x2da   :  { %1185 = vpow2.f32 %v1129_v41  ;;  %v534_v50 = vadd.f32 %v533_v49, %v2142_v15  ;;  %v553_v31 = vpop.f32.mrf.mxu3 }
 0x2db   :  { %v554_v14 = vadd.f32 %v553_v31, %v1717_v40 }
 0x2dc   :  { %v576_v52 = vadd.f32 %v534_v50, %v494_v45 }
 0x2de   :  { %v1130_v1 = vmul.f32 -1.442695, %v576_v52 }
 0x2e0   :  { %v1186_v2 = vpop.eup %1185  ;;  %1187 = vpow2.f32 %v1130_v1 }
 0x2e1   :  { %v560_v3 = vadd.f32 1.0, %v1186_v2  ;;  %v609_v2 = vpop.permute.xlu1 %608 }
 0x2e2   :  { %vm610_vm11 = vcmp.eq.s32.totalorder %v609_v2, 1 }
 0x2e3   :  { %1189 = vrcp.f32 %v560_v3  ;;  %v572_v47 = vand.u32 2147483648, %v560_v3  ;;  %v570_v48 = vand.u32 2147483647, %v560_v3  ;;  %vm566_vm4 = vweird.f32 %v560_v3 }
 0x2e5   :  { %v573_v11 = vor.u32 1.1754944e-38, %v572_v47  ;;  %vm571_vm6 = vcmp.eq.f32.partialorder %v570_v48, 8.507059e+37 }
 0x2e6   :  { %v1188_v5 = vpop.eup %1187 }
 0x2e7   :  { %v580_v7 = vadd.f32 1.0, %v1188_v5  ;;  %v1971_v5 = vld [vmem:[#allocation7 + $0x130] sm:$0xff] }
 0x2e9   :  { %v1190_v8 = vpop.eup %1189  ;;  %1191 = vrcp.f32 %v580_v7  ;;  %v592_v22 = vand.u32 2147483648, %v580_v7  ;;  %v590_v33 = vand.u32 2147483647, %v580_v7  ;;  %vm586_vm8 = vweird.f32 %v580_v7 }
 0x2ea   :  { %v562_v60 = vmul.f32 %v1190_v8, %v560_v3  ;;  %vm567_vm3 = vweird.f32 %v1190_v8 }
 0x2eb   :  { %vm568_vm5 = vmor %vm566_vm4, %vm567_vm3  ;;  %v593_v37 = vor.u32 1.1754944e-38, %v592_v22  ;;  %vm591_vm10 = vcmp.eq.f32.partialorder %v590_v33, 8.507059e+37 }
 0x2ec   :  { %v563_v56 = vsub.f32 1.0, %v562_v60 }
 0x2ee   :  { %v564_v46 = vmul.f32 %v1190_v8, %v563_v56 }
 0x2ef   :  { %v1192_v53 = vpop.eup %1191 }
 0x2f0   :  { %v582_v9 = vmul.f32 %v1192_v53, %v580_v7  ;;  %v565_v10 = vadd.f32 %v1190_v8, %v564_v46  ;;  %vm587_vm7 = vweird.f32 %v1192_v53 }
 0x2f1   :  { %vm588_vm9 = vmor %vm586_vm8, %vm587_vm7 }
 0x2f2   :  { %v583_v12 = vsub.f32 1.0, %v582_v9  ;;  %v569_v16 = vsel %vm568_vm5, %v1190_v8, %v565_v10  ;;  %v614_v8 = vld [vmem:[#allocation4 + $0x68] sm:$0xff] }
 0x2f3   :  { %v574_v19 = vsel %vm571_vm6, %v573_v11, %v569_v16 }
 0x2f4   :  { %v584_v51 = vmul.f32 %v1192_v53, %v583_v12  ;;  %v596_v23 = vmul.f32 %v574_v19, %v554_v14 }
 0x2f6   :  { %v585_v34 = vadd.f32 %v1192_v53, %v584_v51  ;;  %v597_v36 = vadd.f32 %v596_v23, %v495_v18 }
 0x2f8   :  { %v589_v41 = vsel %vm588_vm9, %v1192_v53, %v585_v34  ;;  %1193 = vtanh.f32 %v597_v36 }
 0x2f9   :  { %v594_v45 = vsel %vm591_vm10, %v593_v37, %v589_v41 }
 0x2fa   :  { %v599_v49 = vsub.f32 1.0, %v594_v45  ;;  %v601_v1 = vmul.f32 %v594_v45, %v1844_v25 }
 0x2fe   :  { %v1194_v50 = vpop.eup %1193 }
 0x2ff   :  { %v600_v52 = vmul.f32 %v1194_v50, %v599_v49  ;;  %v615_v50 = vld [vmem:[#allocation4 + $0x70] sm:$0xff] }
 0x301   :  { %v602_v3 = vadd.f32 %v601_v1, %v600_v52 }
 0x303   :  { %v1955_v4 = vsel %vm610_vm11, %v602_v3, %v1844_v25  ;;  %v1966_v25 = vld [vmem:[#allocation7 + $0x148] sm:$0xff] }
 0x304   :  { %632 = vmatmul.f32.vlgmr.msrb.gmra.mxu0 %v1955_v4  ;;  %652 = vmatmul.f32.vlgmr.msrb.gmra.mxu1 %v1955_v4 }
 0x305   :  { %672 = vmatmul.f32.vlgmr.msrb.gmra.mxu2 %v1955_v4  ;;  %896 = vmatpush.msrb.mxu0 %v1849_v26 }
 0x306   :  { %976 = vmatpush.msrb.mxu1 %v1852_v29  ;;  %996 = vmatpush.msrb.mxu2 %v1855_v30  ;;  %v1976_v29 = vld [vmem:[#allocation7 + $0x118] sm:$0xff]  ;;  %v1981_v30 = vld [vmem:[#allocation7 + $0x100] sm:$0xff] }
 0x307   :  { %897 = vmatpush.msrb.mxu0 %v1858_v63 }
 0x308   :  { %977 = vmatpush.msrb.mxu1 %v1861_v20  ;;  %997 = vmatpush.msrb.mxu2 %v1864_v39  ;;  %v1986_v20 = vld [vmem:[#allocation7 + $0xe8] sm:$0xff]  ;;  %v1991_v39 = vld [vmem:[#allocation7 + $0xd0] sm:$0xff] }
 0x309   :  { %898 = vmatpush.msrb.mxu0 %v1966_v25 }
 0x30a   :  { %978 = vmatpush.msrb.mxu1 %v1868_v44  ;;  %998 = vmatpush.msrb.mxu2 %v1871_v27  ;;  %v1996_v44 = vld [vmem:[#allocation7 + $0xb8] sm:$0xff]  ;;  %v2001_v27 = vld [vmem:[#allocation7 + $0xa0] sm:$0xff] }
 0x30b   :  { %899 = vmatpush.msrb.mxu0 %v1971_v5 }
 0x30c   :  { %979 = vmatpush.msrb.mxu1 %v1875_v0  ;;  %999 = vmatpush.msrb.mxu2 %v1878_v42  ;;  %v2006_v0 = vld [vmem:[#allocation7 + $0x88] sm:$0xff]  ;;  %v2011_v42 = vld [vmem:[#allocation7 + $0x70] sm:$0xff] }
 0x30d   :  { %900 = vmatpush.msrb.mxu0 %v1976_v29 }
 0x30e   :  { %980 = vmatpush.msrb.mxu1 %v1882_v17  ;;  %1000 = vmatpush.msrb.mxu2 %v1885_v43  ;;  %v1270_v17 = vld [vmem:[#allocation7 + $0x60] sm:$0xff]  ;;  %v1271_v43 = vld [vmem:[#allocation7 + $0x68] sm:$0xff] }
 0x30f   :  { %901 = vmatpush.msrb.mxu0 %v1981_v30 }
 0x310   :  { %981 = vmatpush.msrb.mxu1 %v1889_v21  ;;  %1001 = vmatpush.msrb.mxu2 %v1892_v59  ;;  %v2014_v21 = vld [vmem:[#allocation7 + $0x58] sm:$0xff]  ;;  %v1273_v59 = vld [vmem:[#allocation7 + $0x48] sm:$0xff] }
 0x311   :  { %902 = vmatpush.msrb.mxu0 %v1986_v20 }
 0x312   :  { %982 = vmatpush.msrb.mxu1 %v1896_v24  ;;  %1002 = vmatpush.msrb.mxu2 %v1899_v58  ;;  %v1274_v24 = vld [vmem:[#allocation7 + $0x50] sm:$0xff]  ;;  %v2017_v58 = vld [vmem:[#allocation7 + $0x40] sm:$0xff] }
 0x313   :  { %903 = vmatpush.msrb.mxu0 %v1991_v39 }
 0x314   :  { %983 = vmatpush.msrb.mxu1 %v1903_v28  ;;  %1003 = vmatpush.msrb.mxu2 %v1906_v61  ;;  %v1276_v28 = vld [vmem:[#allocation7 + $0x30] sm:$0xff]  ;;  %v1277_v61 = vld [vmem:[#allocation7 + $0x38] sm:$0xff] }
 0x315   :  { %904 = vmatpush.msrb.mxu0 %v1996_v44 }
 0x316   :  { %984 = vmatpush.msrb.mxu1 %v1910_v32  ;;  %1004 = vmatpush.msrb.mxu2 %v1913_v62  ;;  %v2020_v32 = vld [vmem:[#allocation7 + $0x28] sm:$0xff]  ;;  %v1279_v62 = vld [vmem:[#allocation7 + $0x18] sm:$0xff] }
 0x317   :  { %905 = vmatpush.msrb.mxu0 %v2001_v27 }
 0x318   :  { %985 = vmatpush.msrb.mxu1 %v1917_v35  ;;  %1005 = vmatpush.msrb.mxu2 %v1920_v57  ;;  %v1280_v35 = vld [vmem:[#allocation7 + $0x20] sm:$0xff]  ;;  %v2023_v57 = vld [vmem:[#allocation7 + $0x10] sm:$0xff] }
 0x319   :  { %906 = vmatpush.msrb.mxu0 %v2006_v0 }
 0x31a   :  { %986 = vmatpush.msrb.mxu1 %v1924_v38  ;;  %1006 = vmatpush.msrb.mxu2 %v1927_v54  ;;  %v1282_v38 = vld [vmem:[#allocation7] sm:$0xff]  ;;  %v1283_v54 = vld [vmem:[#allocation7 + $0x8] sm:$0xff] }
 0x31b   :  { %907 = vmatpush.msrb.mxu0 %v2011_v42 }
 0x31c   :  { %987 = vmatpush.msrb.mxu1 %v1270_v17  ;;  %1007 = vmatpush.msrb.mxu2 %v1271_v43 }
 0x31d   :  { %908 = vmatpush.msrb.mxu0 %v2014_v21 }
 0x31e   :  { %988 = vmatpush.msrb.mxu1 %v1273_v59  ;;  %1008 = vmatpush.msrb.mxu2 %v1274_v24 }
 0x31f   :  { %909 = vmatpush.msrb.mxu0 %v2017_v58 }
 0x320   :  { %989 = vmatpush.msrb.mxu1 %v1276_v28  ;;  %1009 = vmatpush.msrb.mxu2 %v1277_v61 }
 0x321   :  { %910 = vmatpush.msrb.mxu0 %v2020_v32 }
 0x322   :  { %990 = vmatpush.msrb.mxu1 %v1279_v62  ;;  %1010 = vmatpush.msrb.mxu2 %v1280_v35  ;;  %v729_v35 = vpop.permute.xlu2 %728 }
 0x323   :  { %911 = vmatpush.msrb.mxu0 %v2023_v57  ;;  %vm730_vm4 = vcmp.eq.s32.totalorder %v729_v35, 1 }
 0x324   :  { %991 = vmatpush.msrb.mxu1 %v1282_v38  ;;  %1011 = vmatpush.msrb.mxu2 %v1283_v54 }
 0x381   :  { %v633_v7 = vpop.f32.mrf.mxu0  ;;  %v653_v60 = vpop.f32.mrf.mxu1 }
 0x382   :  { %v634_v56 = vadd.f32 %v633_v7, %v2141_v13  ;;  %v654_v55 = vadd.f32 %v653_v60, %v2142_v15 }
 0x384   :  { %v676_v47 = vadd.f32 %v634_v56, %v613_v6  ;;  %v696_v46 = vadd.f32 %v654_v55, %v614_v8 }
 0x386   :  { %v1132_v48 = vmul.f32 -1.442695, %v676_v47  ;;  %v1133_v53 = vmul.f32 -1.442695, %v696_v46 }
 0x388   :  { %1195 = vpow2.f32 %v1132_v48  ;;  %v673_v34 = vpop.f32.mrf.mxu2 }
 0x389   :  { %1197 = vpow2.f32 %v1133_v53  ;;  %v674_v45 = vadd.f32 %v673_v34, %v1717_v40 }
 0x38e   :  { %v1196_v31 = vpop.eup %1195 }
 0x38f   :  { %v1198_v9 = vpop.eup %1197  ;;  %v680_v10 = vadd.f32 1.0, %v1196_v31 }
 0x390   :  { %v700_v11 = vadd.f32 1.0, %v1198_v9 }
 0x391   :  { %1199 = vrcp.f32 %v680_v10  ;;  %v692_v22 = vand.u32 2147483648, %v680_v10  ;;  %v690_v33 = vand.u32 2147483647, %v680_v10  ;;  %vm686_vm13 = vweird.f32 %v680_v10 }
 0x392   :  { %1201 = vrcp.f32 %v700_v11  ;;  %v712_v3 = vand.u32 2147483648, %v700_v11  ;;  %vm706_vm1 = vweird.f32 %v700_v11  ;;  %v710_v17 = vand.u32 2147483647, %v700_v11 }
 0x393   :  { %v693_v41 = vor.u32 1.1754944e-38, %v692_v22  ;;  %vm691_vm15 = vcmp.eq.f32.partialorder %v690_v33, 8.507059e+37 }
 0x394   :  { %v713_v24 = vor.u32 1.1754944e-38, %v712_v3  ;;  %vm711_vm3 = vcmp.eq.f32.partialorder %v710_v17, 8.507059e+37  ;;  %v854_v3 = vld [vmem:[#allocation4 + $0x98] sm:$0xff] }
 0x397   :  { %v1200_v12 = vpop.eup %1199 }
 0x398   :  { %v1202_v14 = vpop.eup %1201  ;;  %v682_v16 = vmul.f32 %v1200_v12, %v680_v10  ;;  %vm687_vm12 = vweird.f32 %v1200_v12 }
 0x399   :  { %v702_v18 = vmul.f32 %v1202_v14, %v700_v11  ;;  %vm688_vm14 = vmor %vm686_vm13, %vm687_vm12  ;;  %vm707_vm0 = vweird.f32 %v1202_v14 }
 0x39a   :  { %v683_v19 = vsub.f32 1.0, %v682_v16  ;;  %vm708_vm2 = vmor %vm706_vm1, %vm707_vm0 }
 0x39b   :  { %v703_v51 = vsub.f32 1.0, %v702_v18 }
 0x39c   :  { %v684_v23 = vmul.f32 %v1200_v12, %v683_v19 }
 0x39d   :  { %v704_v36 = vmul.f32 %v1202_v14, %v703_v51 }
 0x39e   :  { %v685_v37 = vadd.f32 %v1200_v12, %v684_v23 }
 0x39f   :  { %v705_v1 = vadd.f32 %v1202_v14, %v704_v36 }
 0x3a0   :  { %v689_v49 = vsel %vm688_vm14, %v1200_v12, %v685_v37 }
 0x3a1   :  { %v694_v52 = vsel %vm691_vm15, %v693_v41, %v689_v49  ;;  %v709_v59 = vsel %vm708_vm2, %v1202_v14, %v705_v1  ;;  %v735_v14 = vld [vmem:[#allocation4 + $0x88] sm:$0xff]  ;;  %v849_v41 = vpop.permute.xlu2 %848  ;;  %v853_v1 = vld [vmem:[#allocation4 + $0x90] sm:$0xff] }
 0x3a2   :  { %v716_v2 = vmul.f32 %v694_v52, %v674_v45  ;;  %v714_v28 = vsel %vm711_vm3, %v713_v24, %v709_v59  ;;  %vm850_vm13 = vcmp.eq.s32.totalorder %v849_v41, 1 }
 0x3a3   :  { %v719_v61 = vsub.f32 1.0, %v714_v28  ;;  %v721_v54 = vmul.f32 %v714_v28, %v1955_v4 }
 0x3a4   :  { %v717_v43 = vadd.f32 %v716_v2, %v615_v50 }
 0x3a6   :  { %1203 = vtanh.f32 %v717_v43 }
 0x3ac   :  { %v1204_v62 = vpop.eup %1203 }
 0x3ad   :  { %v720_v38 = vmul.f32 %v1204_v62, %v719_v61 }
 0x3af   :  { %v722_v6 = vadd.f32 %v721_v54, %v720_v38 }
 0x3b1   :  { %v2031_v7 = vsel %vm730_vm4, %v722_v6, %v1955_v4 }
 0x3b2   :  { %752 = vmatmul.f32.vlgmr.msrb.gmra.mxu3 %v2031_v7  ;;  %772 = vmatmul.f32.vlgmr.msra.gmra.mxu0 %v2031_v7 }
 0x3b3   :  { %792 = vmatmul.f32.vlgmr.msra.gmra.mxu1 %v2031_v7  ;;  %1016 = vmatpush.msrb.mxu3 %v1849_v26  ;;  %v734_v26 = vld [vmem:[#allocation4 + $0x80] sm:$0xff] }
 0x3b5   :  { %1017 = vmatpush.msrb.mxu3 %v1858_v63 }
 0x3b7   :  { %1018 = vmatpush.msrb.mxu3 %v1966_v25 }
 0x3b9   :  { %1019 = vmatpush.msrb.mxu3 %v1971_v5 }
 0x3bb   :  { %1020 = vmatpush.msrb.mxu3 %v1976_v29  ;;  %v733_v29 = vld [vmem:[#allocation4 + $0x78] sm:$0xff] }
 0x3bd   :  { %1021 = vmatpush.msrb.mxu3 %v1981_v30 }
 0x3bf   :  { %1022 = vmatpush.msrb.mxu3 %v1986_v20 }
 0x3c1   :  { %1023 = vmatpush.msrb.mxu3 %v1991_v39 }
 0x3c3   :  { %1024 = vmatpush.msrb.mxu3 %v1996_v44 }
 0x3c5   :  { %1025 = vmatpush.msrb.mxu3 %v2001_v27 }
 0x3c7   :  { %1026 = vmatpush.msrb.mxu3 %v2006_v0 }
 0x3c9   :  { %1027 = vmatpush.msrb.mxu3 %v2011_v42 }
 0x3cb   :  { %1028 = vmatpush.msrb.mxu3 %v2014_v21 }
 0x3cd   :  { %1029 = vmatpush.msrb.mxu3 %v2017_v58 }
 0x3cf   :  { %1030 = vmatpush.msrb.mxu3 %v2020_v32 }
 0x3d1   :  { %1031 = vmatpush.msrb.mxu3 %v2023_v57 }
 0x42f   :  { %v773_v63 = vpop.f32.mrf.mxu0 }
 0x430   :  { %v774_v4 = vadd.f32 %v773_v63, %v2142_v15  ;;  %v793_v53 = vpop.f32.mrf.mxu1 }
 0x431   :  { %v794_v10 = vadd.f32 %v793_v53, %v1717_v40 }
 0x432   :  { %v816_v25 = vadd.f32 %v774_v4, %v734_v26 }
 0x434   :  { %v1136_v5 = vmul.f32 -1.442695, %v816_v25 }
 0x435   :  { %v753_v30 = vpop.f32.mrf.mxu3 }
 0x436   :  { %1205 = vpow2.f32 %v1136_v5  ;;  %v754_v20 = vadd.f32 %v753_v30, %v2141_v13 }
 0x438   :  { %v796_v39 = vadd.f32 %v754_v20, %v733_v29 }
 0x43a   :  { %v1135_v44 = vmul.f32 -1.442695, %v796_v39 }
 0x43c   :  { %v1206_v27 = vpop.eup %1205  ;;  %1207 = vpow2.f32 %v1135_v44 }
 0x43d   :  { %v820_v0 = vadd.f32 1.0, %v1206_v27 }
 0x43f   :  { %1209 = vrcp.f32 %v820_v0  ;;  %v832_v18 = vand.u32 2147483648, %v820_v0  ;;  %vm826_vm10 = vweird.f32 %v820_v0  ;;  %v830_v51 = vand.u32 2147483647, %v820_v0 }
 0x441   :  { %v833_v33 = vor.u32 1.1754944e-38, %v832_v18  ;;  %vm831_vm12 = vcmp.eq.f32.partialorder %v830_v51, 8.507059e+37 }
 0x442   :  { %v1208_v42 = vpop.eup %1207 }
 0x443   :  { %v800_v21 = vadd.f32 1.0, %v1208_v42 }
 0x445   :  { %1211 = vrcp.f32 %v800_v21  ;;  %v1210_v58 = vpop.eup %1209  ;;  %v812_v55 = vand.u32 2147483648, %v800_v21  ;;  %v810_v46 = vand.u32 2147483647, %v800_v21  ;;  %vm806_vm6 = vweird.f32 %v800_v21 }
 0x446   :  { %v822_v32 = vmul.f32 %v1210_v58, %v820_v0  ;;  %vm827_vm9 = vweird.f32 %v1210_v58 }
 0x447   :  { %v813_v9 = vor.u32 1.1754944e-38, %v812_v55  ;;  %vm811_vm8 = vcmp.eq.f32.partialorder %v810_v46, 8.507059e+37  ;;  %vm828_vm11 = vmor %vm826_vm10, %vm827_vm9 }
 0x448   :  { %v823_v60 = vsub.f32 1.0, %v822_v32  ;;  %v855_v32 = vld [vmem:[#allocation4 + $0xa0] sm:$0xff] }
 0x44a   :  { %v824_v48 = vmul.f32 %v1210_v58, %v823_v60 }
 0x44b   :  { %v1212_v57 = vpop.eup %1211 }
 0x44c   :  { %v802_v8 = vmul.f32 %v1212_v57, %v800_v21  ;;  %vm807_vm5 = vweird.f32 %v1212_v57  ;;  %v825_v16 = vadd.f32 %v1210_v58, %v824_v48 }
 0x44d   :  { %vm808_vm7 = vmor %vm806_vm6, %vm807_vm5 }
 0x44e   :  { %v803_v56 = vsub.f32 1.0, %v802_v8  ;;  %v829_v23 = vsel %vm828_vm11, %v1210_v58, %v825_v16  ;;  %v973_v16 = vld [vmem:[#allocation4 + $0xa8] sm:$0xff] }
 0x44f   :  { %v834_v34 = vsel %vm831_vm12, %v833_v33, %v829_v23  ;;  %v974_v23 = vld [vmem:[#allocation4 + $0xb0] sm:$0xff] }
 0x450   :  { %v804_v47 = vmul.f32 %v1212_v57, %v803_v56  ;;  %v839_v36 = vsub.f32 1.0, %v834_v34  ;;  %v841_v49 = vmul.f32 %v834_v34, %v2031_v7 }
 0x452   :  { %v805_v31 = vadd.f32 %v1212_v57, %v804_v47 }
 0x454   :  { %v809_v11 = vsel %vm808_vm7, %v1212_v57, %v805_v31 }
 0x455   :  { %v814_v12 = vsel %vm811_vm8, %v813_v9, %v809_v11  ;;  %v969_v9 = vpop.permute.xlu0 %968 }
 0x456   :  { %v836_v19 = vmul.f32 %v814_v12, %v794_v10  ;;  %vm970_vm6 = vcmp.eq.s32.totalorder %v969_v9, 1 }
 0x458   :  { %v837_v22 = vadd.f32 %v836_v19, %v735_v14 }
 0x45a   :  { %1213 = vtanh.f32 %v837_v22 }
 0x460   :  { %v1214_v37 = vpop.eup %1213 }
 0x461   :  { %v840_v45 = vmul.f32 %v1214_v37, %v839_v36 }
 0x463   :  { %v842_v50 = vadd.f32 %v841_v49, %v840_v45 }
 0x465   :  { %v2057_v52 = vsel %vm850_vm13, %v842_v50, %v2031_v7 }
 0x466   :  { %872 = vmatmul.f32.vlgmr.msra.gmra.mxu2 %v2057_v52  ;;  %892 = vmatmul.f32.vlgmr.msra.gmra.mxu3 %v2057_v52 }
 0x467   :  { %912 = vmatmul.f32.vlgmr.msrb.gmra.mxu0 %v2057_v52 }
 0x4e4   :  { %v913_v39 = vpop.f32.mrf.mxu0 }
 0x4e5   :  { %v914_v42 = vadd.f32 %v913_v39, %v1717_v40  ;;  %v1089_v39 = vpop.permute.xlu1 %1088 }
 0x4e9   :  { %v873_v2 = vpop.f32.mrf.mxu2  ;;  %v893_v17 = vpop.f32.mrf.mxu3 }
 0x4ea   :  { %v874_v43 = vadd.f32 %v873_v2, %v2141_v13  ;;  %v894_v59 = vadd.f32 %v893_v17, %v2142_v15 }
 0x4ec   :  { %v916_v24 = vadd.f32 %v874_v43, %v853_v1  ;;  %v936_v28 = vadd.f32 %v894_v59, %v854_v3 }
 0x4ee   :  { %v1138_v61 = vmul.f32 -1.442695, %v916_v24  ;;  %v1139_v62 = vmul.f32 -1.442695, %v936_v28 }
 0x4f0   :  { %1215 = vpow2.f32 %v1138_v61 }
 0x4f1   :  { %1217 = vpow2.f32 %v1139_v62 }
 0x4f6   :  { %v1216_v35 = vpop.eup %1215 }
 0x4f7   :  { %v1218_v38 = vpop.eup %1217  ;;  %v920_v54 = vadd.f32 1.0, %v1216_v35 }
 0x4f8   :  { %v940_v6 = vadd.f32 1.0, %v1218_v38  ;;  %v975_v38 = vld [vmem:[#allocation4 + $0xb8] sm:$0xff] }
 0x4f9   :  { %1219 = vrcp.f32 %v920_v54  ;;  %v932_v5 = vand.u32 2147483648, %v920_v54  ;;  %v930_v20 = vand.u32 2147483647, %v920_v54  ;;  %vm926_vm15 = vweird.f32 %v920_v54 }
 0x4fa   :  { %1221 = vrcp.f32 %v940_v6  ;;  %v952_v60 = vand.u32 2147483648, %v940_v6  ;;  %vm946_vm3 = vweird.f32 %v940_v6  ;;  %v950_v56 = vand.u32 2147483647, %v940_v6 }
 0x4fb   :  { %v933_v0 = vor.u32 1.1754944e-38, %v932_v5  ;;  %vm931_vm1 = vcmp.eq.f32.partialorder %v930_v20, 8.507059e+37 }
 0x4fc   :  { %v953_v46 = vor.u32 1.1754944e-38, %v952_v60  ;;  %vm951_vm5 = vcmp.eq.f32.partialorder %v950_v56, 8.507059e+37 }
 0x4ff   :  { %v1220_v7 = vpop.eup %1219 }
 0x500   :  { %v1222_v26 = vpop.eup %1221  ;;  %v922_v63 = vmul.f32 %v1220_v7, %v920_v54  ;;  %vm927_vm14 = vweird.f32 %v1220_v7 }
 0x501   :  { %v942_v4 = vmul.f32 %v1222_v26, %v940_v6  ;;  %vm928_vm0 = vmor %vm926_vm15, %vm927_vm14  ;;  %vm947_vm2 = vweird.f32 %v1222_v26  ;;  %vm1090_vm15 = vcmp.eq.s32.totalorder %v1089_v39, 1 }
 0x502   :  { %v923_v25 = vsub.f32 1.0, %v922_v63  ;;  %vm948_vm4 = vmor %vm946_vm3, %vm947_vm2 }
 0x503   :  { %v943_v29 = vsub.f32 1.0, %v942_v4 }
 0x504   :  { %v924_v30 = vmul.f32 %v1220_v7, %v923_v25 }
 0x505   :  { %v944_v44 = vmul.f32 %v1222_v26, %v943_v29 }
 0x506   :  { %v925_v27 = vadd.f32 %v1220_v7, %v924_v30 }
 0x507   :  { %v945_v57 = vadd.f32 %v1222_v26, %v944_v44 }
 0x508   :  { %v929_v21 = vsel %vm928_vm0, %v1220_v7, %v925_v27 }
 0x509   :  { %v934_v58 = vsel %vm931_vm1, %v933_v0, %v929_v21  ;;  %v949_v47 = vsel %vm948_vm4, %v1222_v26, %v945_v57 }
 0x50a   :  { %v956_v8 = vmul.f32 %v934_v58, %v914_v42  ;;  %v954_v48 = vsel %vm951_vm5, %v953_v46, %v949_v47 }
 0x50b   :  { %v959_v53 = vsub.f32 1.0, %v954_v48  ;;  %v961_v11 = vmul.f32 %v954_v48, %v2057_v52 }
 0x50c   :  { %v957_v55 = vadd.f32 %v956_v8, %v855_v32 }
 0x50e   :  { %1223 = vtanh.f32 %v957_v55 }
 0x514   :  { %v1224_v31 = vpop.eup %1223 }
 0x515   :  { %v960_v10 = vmul.f32 %v1224_v31, %v959_v53 }
 0x517   :  { %v962_v12 = vadd.f32 %v961_v11, %v960_v10 }
 0x519   :  { %v2067_v14 = vsel %vm970_vm6, %v962_v12, %v2057_v52 }
 0x51a   :  { %992 = vmatmul.f32.vlgmr.msrb.gmra.mxu1 %v2067_v14  ;;  %1012 = vmatmul.f32.vlgmr.msrb.gmra.mxu2 %v2067_v14 }
 0x51b   :  { %1032 = vmatmul.f32.vlgmr.msrb.gmra.mxu3 %v2067_v14 }
 0x597   :  { %v993_v18 = vpop.f32.mrf.mxu1 }
 0x598   :  { %v994_v19 = vadd.f32 %v993_v18, %v2141_v13 }
 0x59a   :  { %v1036_v51 = vadd.f32 %v994_v19, %v973_v16 }
 0x59c   :  { %v1141_v22 = vmul.f32 -1.442695, %v1036_v51 }
 0x59d   :  { %v1013_v33 = vpop.f32.mrf.mxu2 }
 0x59e   :  { %1225 = vpow2.f32 %v1141_v22  ;;  %v1014_v34 = vadd.f32 %v1013_v33, %v2142_v15  ;;  %v1033_v59 = vpop.f32.mrf.mxu3 }
 0x59f   :  { %v1034_v62 = vadd.f32 %v1033_v59, %v1717_v40 }
 0x5a0   :  { %v1056_v36 = vadd.f32 %v1014_v34, %v974_v23 }
 0x5a2   :  { %v1142_v37 = vmul.f32 -1.442695, %v1056_v36 }
 0x5a4   :  { %v1226_v41 = vpop.eup %1225  ;;  %1227 = vpow2.f32 %v1142_v37 }
 0x5a5   :  { %v1040_v45 = vadd.f32 1.0, %v1226_v41 }
 0x5a7   :  { %1229 = vrcp.f32 %v1040_v45  ;;  %v1052_v13 = vand.u32 2147483648, %v1040_v45  ;;  %v1050_v17 = vand.u32 2147483647, %v1040_v45  ;;  %vm1046_vm8 = vweird.f32 %v1040_v45 }
 0x5a9   :  { %v1053_v28 = vor.u32 1.1754944e-38, %v1052_v13  ;;  %vm1051_vm10 = vcmp.eq.f32.partialorder %v1050_v17, 8.507059e+37 }
 0x5aa   :  { %v1228_v49 = vpop.eup %1227 }
 0x5ab   :  { %v1060_v50 = vadd.f32 1.0, %v1228_v49 }
 0x5ad   :  { %v1230_v52 = vpop.eup %1229  ;;  %1231 = vrcp.f32 %v1060_v50  ;;  %v1072_v7 = vand.u32 2147483648, %v1060_v50  ;;  %v1070_v63 = vand.u32 2147483647, %v1060_v50  ;;  %vm1066_vm12 = vweird.f32 %v1060_v50 }
 0x5ae   :  { %v1042_v1 = vmul.f32 %v1230_v52, %v1040_v45  ;;  %vm1047_vm7 = vweird.f32 %v1230_v52 }
 0x5af   :  { %vm1048_vm9 = vmor %vm1046_vm8, %vm1047_vm7  ;;  %v1073_v5 = vor.u32 1.1754944e-38, %v1072_v7  ;;  %vm1071_vm14 = vcmp.eq.f32.partialorder %v1070_v63, 8.507059e+37 }
 0x5b0   :  { %v1043_v2 = vsub.f32 1.0, %v1042_v1 }
 0x5b2   :  { %v1044_v3 = vmul.f32 %v1230_v52, %v1043_v2 }
 0x5b3   :  { %v1232_v43 = vpop.eup %1231 }
 0x5b4   :  { %v1062_v24 = vmul.f32 %v1232_v43, %v1060_v50  ;;  %v1045_v15 = vadd.f32 %v1230_v52, %v1044_v3  ;;  %vm1067_vm11 = vweird.f32 %v1232_v43 }
 0x5b5   :  { %vm1068_vm13 = vmor %vm1066_vm12, %vm1067_vm11 }
 0x5b6   :  { %v1063_v61 = vsub.f32 1.0, %v1062_v24  ;;  %v1049_v35 = vsel %vm1048_vm9, %v1230_v52, %v1045_v15 }
 0x5b7   :  { %v1054_v54 = vsel %vm1051_vm10, %v1053_v28, %v1049_v35 }
 0x5b8   :  { %v1064_v6 = vmul.f32 %v1232_v43, %v1063_v61  ;;  %v1076_v26 = vmul.f32 %v1054_v54, %v1034_v62 }
 0x5ba   :  { %v1065_v4 = vadd.f32 %v1232_v43, %v1064_v6  ;;  %v1077_v25 = vadd.f32 %v1076_v26, %v975_v38 }
 0x5bc   :  { %v1069_v29 = vsel %vm1068_vm13, %v1232_v43, %v1065_v4  ;;  %1233 = vtanh.f32 %v1077_v25 }
 0x5bd   :  { %v1074_v30 = vsel %vm1071_vm14, %v1073_v5, %v1069_v29 }
 0x5be   :  { %v1079_v20 = vsub.f32 1.0, %v1074_v30  ;;  %v1081_v27 = vmul.f32 %v1074_v30, %v2067_v14 }
 0x5c2   :  { %v1234_v40 = vpop.eup %1233 }
 0x5c3   :  { %v1080_v44 = vmul.f32 %v1234_v40, %v1079_v20 }
 0x5c5   :  { %v1082_v0 = vadd.f32 %v1081_v27, %v1080_v44 }
 0x5c7   :  { %v1091_v42 = vsel %vm1090_vm15, %v1082_v0, %v2067_v14 }
 0x5c8   :  { %1092 = vst [vmem:[#allocation9] sm:$0xff] %v1091_v42 }
 0x5c9 PF:  { %s1100_s22 = sshll.u32 %s2085_s5, 4  ;;  %s1368_s23 = smov [#allocation9]   ;;  %s1101_s22 = int_to_ptr.hbm [resolvable:$true] %s1100_s22 }
 0x5ca   :  { %s1098_s24 = sshll.u32 %s1368_s23, 4  ;;  %s1099_s24 = int_to_ptr.vmem [resolvable:$true] %s1098_s24 }
 0x5cb   :  { %1103 = dma.vmem_to_hbm [thread:$0]  %s1099_s24, 128, %s1101_s22, [#allocation6]  }
 0x5cc   :  { %1360 = dma.done.wait [#allocation6], 128  }
 0x5cd   :  { %1361 = vsyncadd [#allocation6], 4294967168 }
 0x5ce   :  { %1108 = vsyncpa [#allocation5], 1 }
 0x5cf   :  { %1109 = vsyncpa [#allocation8], 1 }
 0x5d0   :  { %1110 = vsyncpa [#allocation6], 1 }

</bundles_post_ra>
